<compile_context>
chip_gen: v6e
topology: v6e:2x2x1
jax: 0.10.0
libtpu: 0.0.40
codegen_flags: <defaults>
</compile_context>

<pallas_src>
import math
import jax
import jax.numpy as jnp
from jax.experimental import pallas as pl
from jax.experimental.pallas import tpu as pltpu

# ---- model hyper-parameters (the PyTorch module reads these as globals) ----
d_model = 32
d_k = 8
d_v = 8
n_heads = 4
d_ff = 64

F32 = jnp.float32
BF16 = jnp.bfloat16
_SCALE = 1.0 / math.sqrt(d_k)
_LN_EPS = 1e-5

HD = n_heads * d_k      # 32
HV = n_heads * d_v      # 32

# -------- column offsets inside the packed (d_model, 384) weight slab --------
C_SA_QKV = 0                       # width 2*HD + HV = 96   [Wq | Wk | Wv]
C_SA_WO = C_SA_QKV + 2 * HD + HV   # 96,  width d_model
C_EA_WQ = C_SA_WO + d_model        # 128, width HD
C_EA_KV = C_EA_WQ + HD             # 160, width HD + HV = 64
C_EA_WO = C_EA_KV + HD + HV        # 224, width d_model
C_FF_W1 = C_EA_WO + d_model        # 256, width d_ff
C_FF_W2T = C_FF_W1 + d_ff          # 320, width d_ff   (ff_w2 stored transposed)
W_SLAB_COLS = C_FF_W2T + d_ff      # 384

# -------- row indices inside the packed (16, 128) bias / LN slab --------
R_SA_BQKV, R_SA_BO, R_SA_G, R_SA_B = 0, 1, 2, 3
R_EA_BQ, R_EA_BKV, R_EA_BO, R_EA_G, R_EA_B = 4, 5, 6, 7, 8
R_FF_B1, R_FF_B2, R_FF_G, R_FF_B = 9, 10, 11, 12
B_SLAB_ROWS = 16


# =====================================================================
# Fused decoder-layer kernel: one grid step == one batch element.
# =====================================================================
def _decoder_layer_kernel(dec_ref, enc_ref, sbias_ref, ebias_ref,
                          w_ref, p_ref,
                          out_ref, sattn_ref, eattn_ref):
    x = dec_ref[0]            # (S,  d_model) f32 -- decoder input / residual
    enc = enc_ref[0]          # (Se, d_model) f32
    sbias = sbias_ref[0]      # (S, S)  additive mask bias (0 or -1e9)
    ebias = ebias_ref[0]      # (S, Se)
    W = w_ref[...]            # (d_model, 384) bf16 packed weights
    P = p_ref[...]            # (16, 128)      f32 packed biases / LN params

    def brow(row, width):     # (1, width) slice of the bias slab
        return P[row:row + 1, :width]

    def mm(a, col0, width):   # f32 activations x bf16 weight slice -> f32
        return jnp.dot(a.astype(BF16), W[:, col0:col0 + width],
                       preferred_element_type=F32)

    def layer_norm(y, g_row, b_row):
        mean = jnp.mean(y, axis=-1, keepdims=True)
        var = jnp.mean(jnp.square(y - mean), axis=-1, keepdims=True)
        return ((y - mean) * jax.lax.rsqrt(var + _LN_EPS)
                * brow(g_row, d_model) + brow(b_row, d_model))

    def attention(q, k, v, bias2d, attn_out_ref):
        # q: (Sq, H*d_k), k: (Sk, H*d_k), v: (Sk, H*d_v), bias2d: (Sq, Sk)
        attn_rows, ctx_cols = [], []
        for h in range(n_heads):              # static unroll, H=4 tiny matmuls
            qh = q[:, h * d_k:(h + 1) * d_k]
            kh = k[:, h * d_k:(h + 1) * d_k]
            vh = v[:, h * d_v:(h + 1) * d_v]
            s = jax.lax.dot_general(qh, kh, (((1,), (1,)), ((), ())),
                                    preferred_element_type=F32)
            s = s * _SCALE + bias2d
            # No max-subtraction: scores are bounded and masked entries carry
            # -1e9, which underflows exp() to exactly 0.
            e = jnp.exp(s)
            a = e * pl.reciprocal(jnp.sum(e, axis=-1, keepdims=True),
                                  approx=True)
            attn_rows.append(a)
            ctx_cols.append(jnp.dot(a, vh, preferred_element_type=F32))
        attn_out_ref[0] = jnp.concatenate(attn_rows, axis=0)   # (H*Sq, Sk)
        return jnp.concatenate(ctx_cols, axis=-1)              # (Sq, H*d_v)

    # ---------------- decoder self-attention (fused QKV, one matmul) ---------
    qkv = mm(x, C_SA_QKV, 2 * HD + HV) + brow(R_SA_BQKV, 2 * HD + HV)  # (S,96)
    ctx = attention(qkv[:, :HD], qkv[:, HD:2 * HD], qkv[:, 2 * HD:],
                    sbias, sattn_ref)
    x1 = layer_norm(mm(ctx, C_SA_WO, d_model) + brow(R_SA_BO, d_model) + x,
                    R_SA_G, R_SA_B)

    # ---------------- encoder-decoder attention (fused KV) -------------------
    q2 = mm(x1, C_EA_WQ, HD) + brow(R_EA_BQ, HD)                 # (S, 32)
    kv = mm(enc, C_EA_KV, HD + HV) + brow(R_EA_BKV, HD + HV)     # (Se, 64)
    ctx2 = attention(q2, kv[:, :HD], kv[:, HD:], ebias, eattn_ref)
    x2 = layer_norm(mm(ctx2, C_EA_WO, d_model) + brow(R_EA_BO, d_model) + x1,
                    R_EA_G, R_EA_B)

    # ---------------- position-wise FFN (Conv1d k=1 as matmuls) --------------
    h = jnp.maximum(mm(x2, C_FF_W1, d_ff) + brow(R_FF_B1, d_ff), 0.0)  # (S,64)
    # ff_w2 is stored transposed (d_model, d_ff); contract over d_ff.
    y = jax.lax.dot_general(h.astype(BF16), W[:, C_FF_W2T:C_FF_W2T + d_ff],
                            (((1,), (1,)), ((), ())),
                            preferred_element_type=F32)
    y = y + brow(R_FF_B2, d_model) + x2
    out_ref[0] = layer_norm(y, R_FF_G, R_FF_B)


# =====================================================================
# Wrapper: one pallas_call for the whole DecoderLayer forward.
# =====================================================================
def decoder_layer(dec_inputs, enc_outputs, dec_self_attn_mask, dec_enc_attn_mask,
                  w_slab, b_slab):
    """dec_inputs: (B, S, d_model); enc_outputs: (B, Se, d_model);
    masks: bool, True == masked out; w_slab/b_slab: packed parameters."""
    B, S, _ = dec_inputs.shape
    Se = enc_outputs.shape[1]

    # boolean mask -> additive bias (masked_fill_(-1e9) equivalent)
    neg = jnp.float32(-1e9)
    sbias = jnp.where(dec_self_attn_mask, neg, jnp.float32(0.0)).astype(F32)
    ebias = jnp.where(dec_enc_attn_mask, neg, jnp.float32(0.0)).astype(F32)

    grid_spec = pltpu.PrefetchScalarGridSpec(
        num_scalar_prefetch=0,
        grid=(B,),
        in_specs=[
            pl.BlockSpec((1, S, d_model), lambda b: (b, 0, 0)),
            pl.BlockSpec((1, Se, d_model), lambda b: (b, 0, 0)),
            pl.BlockSpec((1, S, S), lambda b: (b, 0, 0)),
            pl.BlockSpec((1, S, Se), lambda b: (b, 0, 0)),
            pl.BlockSpec(w_slab.shape, lambda b: (0, 0)),   # constant block
            pl.BlockSpec(b_slab.shape, lambda b: (0, 0)),   # constant block
        ],
        out_specs=[
            pl.BlockSpec((1, S, d_model), lambda b: (b, 0, 0)),
            pl.BlockSpec((1, n_heads * S, S), lambda b: (b, 0, 0)),
            pl.BlockSpec((1, n_heads * S, Se), lambda b: (b, 0, 0)),
        ],
    )

    out, sattn, eattn = pl.pallas_call(
        _decoder_layer_kernel,
        out_shape=(
            jax.ShapeDtypeStruct((B, S, d_model), F32),
            jax.ShapeDtypeStruct((B, n_heads * S, S), F32),
            jax.ShapeDtypeStruct((B, n_heads * S, Se), F32),
        ),
        grid_spec=grid_spec,
        compiler_params=pltpu.CompilerParams(
            dimension_semantics=("parallel",)),   # v7x: batch split over 2 TCs
    )(dec_inputs, enc_outputs, sbias, ebias, w_slab, b_slab)

    # dense (H*S, Sk) tiles -> PyTorch (B, H, S, Sk) layout (free reshape)
    return (out,
            sattn.reshape(B, n_heads, S, S),
            eattn.reshape(B, n_heads, S, Se))


# =====================================================================
# Parameter handling: PyTorch-layout params -> two packed VMEM slabs
# (one-time conversion, equivalent of a state_dict load).
# =====================================================================
def pack_decoder_params(params):
    sa, ea, ff = params["self_attn"], params["enc_attn"], params["ffn"]

    # weight slab: (d_model, 384) bf16; every piece has d_model(=H*d_v) rows
    w_slab = jnp.concatenate(
        [sa["wq"], sa["wk"], sa["wv"], sa["wo"],
         ea["wq"], ea["wk"], ea["wv"], ea["wo"],
         ff["w1"], ff["w2"].T], axis=1).astype(BF16)
    assert w_slab.shape == (d_model, W_SLAB_COLS)

    rows = [
        jnp.concatenate([sa["bq"].reshape(-1), sa["bk"].reshape(-1),
                         sa["bv"].reshape(-1)]),                 # R_SA_BQKV
        sa["bo"].reshape(-1), sa["ln_g"].reshape(-1), sa["ln_b"].reshape(-1),
        ea["bq"].reshape(-1),
        jnp.concatenate([ea["bk"].reshape(-1), ea["bv"].reshape(-1)]),
        ea["bo"].reshape(-1), ea["ln_g"].reshape(-1), ea["ln_b"].reshape(-1),
        ff["b1"].reshape(-1), ff["b2"].reshape(-1),
        ff["ln_g"].reshape(-1), ff["ln_b"].reshape(-1),
    ]
    b_slab = jnp.zeros((B_SLAB_ROWS, 128), F32)
    for i, r in enumerate(rows):
        b_slab = b_slab.at[i, :r.shape[0]].set(r.astype(F32))
    return w_slab, b_slab


def init_mha_params(key):
    ks = jax.random.split(key, 4)
    s = 0.05
    return {
        "wq": s * jax.random.normal(ks[0], (d_model, n_heads * d_k), F32),
        "bq": jnp.zeros((1, n_heads * d_k), F32),
        "wk": s * jax.random.normal(ks[1], (d_model, n_heads * d_k), F32),
        "bk": jnp.zeros((1, n_heads * d_k), F32),
        "wv": s * jax.random.normal(ks[2], (d_model, n_heads * d_v), F32),
        "bv": jnp.zeros((1, n_heads * d_v), F32),
        "wo": s * jax.random.normal(ks[3], (n_heads * d_v, d_model), F32),
        "bo": jnp.zeros((1, d_model), F32),
        "ln_g": jnp.ones((1, d_model), F32),
        "ln_b": jnp.zeros((1, d_model), F32),
    }


def init_ffn_params(key):
    k1, k2 = jax.random.split(key, 2)
    s = 0.05
    return {
        "w1": s * jax.random.normal(k1, (d_model, d_ff), F32),
        "b1": jnp.zeros((1, d_ff), F32),
        "w2": s * jax.random.normal(k2, (d_ff, d_model), F32),
        "b2": jnp.zeros((1, d_model), F32),
        "ln_g": jnp.ones((1, d_model), F32),
        "ln_b": jnp.zeros((1, d_model), F32),
    }


# =====================================================================
# Pure-JAX reference (PyTorch-layout params) for a numerical sanity check.
# =====================================================================
def _ref_layer_norm(y, g, b):
    mean = y.mean(-1, keepdims=True)
    var = ((y - mean) ** 2).mean(-1, keepdims=True)
    return (y - mean) / jnp.sqrt(var + _LN_EPS) * g + b


def _ref_mha(xq, xk, xv, mask, p):
    B, Sq, _ = xq.shape
    Sk = xk.shape[1]
    q = (xq @ p["wq"] + p["bq"]).reshape(B, Sq, n_heads, d_k).transpose(0, 2, 1, 3)
    k = (xk @ p["wk"] + p["bk"]).reshape(B, Sk, n_heads, d_k).transpose(0, 2, 1, 3)
    v = (xv @ p["wv"] + p["bv"]).reshape(B, Sk, n_heads, d_v).transpose(0, 2, 1, 3)
    scores = jnp.einsum('bhqd,bhkd->bhqk', q, k) * _SCALE
    scores = jnp.where(mask[:, None], jnp.float32(-1e9), scores)
    attn = jax.nn.softmax(scores, axis=-1)
    ctx = jnp.einsum('bhqk,bhkd->bhqd', attn, v)
    ctx = ctx.transpose(0, 2, 1, 3).reshape(B, Sq, n_heads * d_v)
    out = ctx @ p["wo"] + p["bo"]
    return _ref_layer_norm(out + xq, p["ln_g"], p["ln_b"]), attn


def _ref_decoder(dec, enc, smask, emask, params):
    x, sa = _ref_mha(dec, dec, dec, smask, params["self_attn"])
    x, ea = _ref_mha(x, enc, enc, emask, params["enc_attn"])
    ff = params["ffn"]
    h = jnp.maximum(x @ ff["w1"] + ff["b1"], 0.0)
    y = h @ ff["w2"] + ff["b2"] + x
    return _ref_layer_norm(y, ff["ln_g"], ff["ln_b"]), sa, ea


# =====================================================================
if __name__ == "__main__":
    key = jax.random.PRNGKey(0)
    k_params, k_dec, k_enc = jax.random.split(key, 3)
    kp1, kp2, kp3 = jax.random.split(k_params, 3)

    params = {
        "self_attn": init_mha_params(kp1),
        "enc_attn": init_mha_params(kp2),
        "ffn": init_ffn_params(kp3),
    }
    w_slab, b_slab = pack_decoder_params(params)

    B, tgt_len, src_len = 2, 8, 8
    dec_inputs = jax.random.normal(k_dec, (B, tgt_len, d_model), F32)
    enc_outputs = jax.random.normal(k_enc, (B, src_len, d_model), F32)

    # causal (subsequent) mask for decoder self-attention; no mask for enc-dec
    causal = jnp.triu(jnp.ones((tgt_len, tgt_len), jnp.bool_), k=1)
    dec_self_attn_mask = jnp.broadcast_to(causal, (B, tgt_len, tgt_len))
    dec_enc_attn_mask = jnp.zeros((B, tgt_len, src_len), jnp.bool_)

    dec_fn = jax.jit(decoder_layer)
    dec_out, self_attn, enc_attn = dec_fn(
        dec_inputs, enc_outputs, dec_self_attn_mask, dec_enc_attn_mask,
        w_slab, b_slab)
    jax.block_until_ready((dec_out, self_attn, enc_attn))

    assert dec_out.shape == (B, tgt_len, d_model)
    assert self_attn.shape == (B, n_heads, tgt_len, tgt_len)
    assert enc_attn.shape == (B, n_heads, tgt_len, src_len)

    # numerical sanity check against a pure-JAX reference of the PyTorch module
    ref_out, ref_sa, ref_ea = _ref_decoder(
        dec_inputs, enc_outputs, dec_self_attn_mask, dec_enc_attn_mask, params)
    assert jnp.allclose(dec_out, ref_out, atol=2e-2, rtol=2e-2)
    assert jnp.allclose(self_attn, ref_sa, atol=2e-2, rtol=2e-2)
    assert jnp.allclose(enc_attn, ref_ea, atol=2e-2, rtol=2e-2)

    print("KERNEL_OK")
</pallas_src>

<mosaic_0001>
module attributes {stable_mosaic.version = 11 : i64} {
  func.func @_decoder_layer_kernel(%arg0: i32, %arg1: memref<1x8x32xf32, #tpu.memory_space<vmem>>, %arg2: memref<1x8x32xf32, #tpu.memory_space<vmem>>, %arg3: memref<1x8x8xf32, #tpu.memory_space<vmem>>, %arg4: memref<1x8x8xf32, #tpu.memory_space<vmem>>, %arg5: memref<32x384xbf16, #tpu.memory_space<vmem>>, %arg6: memref<16x128xf32, #tpu.memory_space<vmem>>, %arg7: memref<1x8x32xf32, #tpu.memory_space<vmem>>, %arg8: memref<1x32x8xf32, #tpu.memory_space<vmem>>, %arg9: memref<1x32x8xf32, #tpu.memory_space<vmem>>) attributes {dimension_semantics = [#tpu.dimension_semantics<parallel>], iteration_bounds = array<i64: 2>, scalar_prefetch = 0 : i64, scratch_operands = 0 : i64, tpu.core_type = #tpu.core_type<tc>, window_params = [{transform_indices = @transform_0, window_bounds = array<i64: 1, 8, 32>}, {transform_indices = @transform_1, window_bounds = array<i64: 1, 8, 32>}, {transform_indices = @transform_2, window_bounds = array<i64: 1, 8, 8>}, {transform_indices = @transform_3, window_bounds = array<i64: 1, 8, 8>}, {pipeline_mode = #tpu.pipeline_mode<synchronous>, transform_indices = @transform_4, window_bounds = array<i64: 32, 384>}, {pipeline_mode = #tpu.pipeline_mode<synchronous>, transform_indices = @transform_5, window_bounds = array<i64: 16, 128>}, {transform_indices = @transform_6, window_bounds = array<i64: 1, 8, 32>}, {transform_indices = @transform_7, window_bounds = array<i64: 1, 32, 8>}, {transform_indices = @transform_8, window_bounds = array<i64: 1, 32, 8>}]} {
    %c0 = arith.constant 0 : index
    %c0_0 = arith.constant 0 : index
    %c0_1 = arith.constant 0 : index
    %0 = vector.load %arg1[%c0, %c0_0, %c0_1] : memref<1x8x32xf32, #tpu.memory_space<vmem>>, vector<1x8x32xf32>
    %1 = vector.shape_cast %0 : vector<1x8x32xf32> to vector<8x32xf32>
    %c0_2 = arith.constant 0 : index
    %c0_3 = arith.constant 0 : index
    %c0_4 = arith.constant 0 : index
    %2 = vector.load %arg2[%c0_2, %c0_3, %c0_4] : memref<1x8x32xf32, #tpu.memory_space<vmem>>, vector<1x8x32xf32>
    %3 = vector.shape_cast %2 : vector<1x8x32xf32> to vector<8x32xf32>
    %c0_5 = arith.constant 0 : index
    %c0_6 = arith.constant 0 : index
    %c0_7 = arith.constant 0 : index
    %4 = vector.load %arg3[%c0_5, %c0_6, %c0_7] : memref<1x8x8xf32, #tpu.memory_space<vmem>>, vector<1x8x8xf32>
    %5 = vector.shape_cast %4 : vector<1x8x8xf32> to vector<8x8xf32>
    %c0_8 = arith.constant 0 : index
    %c0_9 = arith.constant 0 : index
    %c0_10 = arith.constant 0 : index
    %6 = vector.load %arg4[%c0_8, %c0_9, %c0_10] : memref<1x8x8xf32, #tpu.memory_space<vmem>>, vector<1x8x8xf32>
    %7 = vector.shape_cast %6 : vector<1x8x8xf32> to vector<8x8xf32>
    %c0_11 = arith.constant 0 : index
    %c0_12 = arith.constant 0 : index
    %8 = vector.load %arg5[%c0_11, %c0_12] : memref<32x384xbf16, #tpu.memory_space<vmem>>, vector<32x384xbf16>
    %c0_13 = arith.constant 0 : index
    %c0_14 = arith.constant 0 : index
    %9 = vector.load %arg6[%c0_13, %c0_14] : memref<16x128xf32, #tpu.memory_space<vmem>>, vector<16x128xf32>
    %10 = arith.truncf %1 : vector<8x32xf32> to vector<8x32xbf16>
    %11 = vector.extract_strided_slice %8 {offsets = [0, 0], sizes = [32, 96], strides = [1, 1]} : vector<32x384xbf16> to vector<32x96xbf16>
    %cst = arith.constant dense<0.000000e+00> : vector<8x96xf32>
    %12 = tpu.matmul %10, %11, %cst {dimension_numbers = #tpu.dot_dimension_numbers<[1], [0], [0], [1], [0, 0, 1, 1], [], []>} : vector<8x32xbf16>, vector<32x96xbf16>, vector<8x96xf32> -> vector<8x96xf32>
    %13 = vector.extract_strided_slice %9 {offsets = [0, 0], sizes = [1, 96], strides = [1, 1]} : vector<16x128xf32> to vector<1x96xf32>
    %14 = vector.broadcast %13 : vector<1x96xf32> to vector<8x96xf32>
    %15 = arith.addf %12, %14 : vector<8x96xf32>
    %16 = vector.extract_strided_slice %15 {offsets = [0, 0], sizes = [8, 32], strides = [1, 1]} : vector<8x96xf32> to vector<8x32xf32>
    %17 = vector.extract_strided_slice %15 {offsets = [0, 32], sizes = [8, 32], strides = [1, 1]} : vector<8x96xf32> to vector<8x32xf32>
    %18 = vector.extract_strided_slice %15 {offsets = [0, 64], sizes = [8, 32], strides = [1, 1]} : vector<8x96xf32> to vector<8x32xf32>
    %19 = vector.extract_strided_slice %16 {offsets = [0, 0], sizes = [8, 8], strides = [1, 1]} : vector<8x32xf32> to vector<8x8xf32>
    %20 = vector.extract_strided_slice %17 {offsets = [0, 0], sizes = [8, 8], strides = [1, 1]} : vector<8x32xf32> to vector<8x8xf32>
    %21 = vector.extract_strided_slice %18 {offsets = [0, 0], sizes = [8, 8], strides = [1, 1]} : vector<8x32xf32> to vector<8x8xf32>
    %cst_15 = arith.constant dense<0.000000e+00> : vector<8x8xf32>
    %22 = tpu.matmul %19, %20, %cst_15 {dimension_numbers = #tpu.dot_dimension_numbers<[1], [1], [0], [0], [0, 0, 1, 0], [], []>} : vector<8x8xf32>, vector<8x8xf32>, vector<8x8xf32> -> vector<8x8xf32>
    %cst_16 = arith.constant 0.353553385 : f32
    %23 = vector.broadcast %cst_16 : f32 to vector<8x8xf32>
    %24 = arith.mulf %22, %23 : vector<8x8xf32>
    %25 = arith.addf %24, %5 : vector<8x8xf32>
    %26 = math.exp %25 : vector<8x8xf32>
    %cst_17 = arith.constant dense<0.000000e+00> : vector<8xf32>
    %27 = vector.multi_reduction <add>, %26, %cst_17 [1] : vector<8x8xf32> to vector<8xf32>
    %28 = vector.shape_cast %27 : vector<8xf32> to vector<8x1xf32>
    %29 = tpu.reciprocal %28 {approx = true} : vector<8x1xf32> -> vector<8x1xf32>
    %30 = vector.broadcast %29 : vector<8x1xf32> to vector<8x8xf32>
    %31 = arith.mulf %26, %30 : vector<8x8xf32>
    %cst_18 = arith.constant dense<0.000000e+00> : vector<8x8xf32>
    %32 = tpu.matmul %31, %21, %cst_18 {dimension_numbers = #tpu.dot_dimension_numbers<[1], [0], [0], [1], [0, 0, 1, 1], [], []>} : vector<8x8xf32>, vector<8x8xf32>, vector<8x8xf32> -> vector<8x8xf32>
    %33 = vector.extract_strided_slice %16 {offsets = [0, 8], sizes = [8, 8], strides = [1, 1]} : vector<8x32xf32> to vector<8x8xf32>
    %34 = vector.extract_strided_slice %17 {offsets = [0, 8], sizes = [8, 8], strides = [1, 1]} : vector<8x32xf32> to vector<8x8xf32>
    %35 = vector.extract_strided_slice %18 {offsets = [0, 8], sizes = [8, 8], strides = [1, 1]} : vector<8x32xf32> to vector<8x8xf32>
    %cst_19 = arith.constant dense<0.000000e+00> : vector<8x8xf32>
    %36 = tpu.matmul %33, %34, %cst_19 {dimension_numbers = #tpu.dot_dimension_numbers<[1], [1], [0], [0], [0, 0, 1, 0], [], []>} : vector<8x8xf32>, vector<8x8xf32>, vector<8x8xf32> -> vector<8x8xf32>
    %cst_20 = arith.constant 0.353553385 : f32
    %37 = vector.broadcast %cst_20 : f32 to vector<8x8xf32>
    %38 = arith.mulf %36, %37 : vector<8x8xf32>
    %39 = arith.addf %38, %5 : vector<8x8xf32>
    %40 = math.exp %39 : vector<8x8xf32>
    %cst_21 = arith.constant dense<0.000000e+00> : vector<8xf32>
    %41 = vector.multi_reduction <add>, %40, %cst_21 [1] : vector<8x8xf32> to vector<8xf32>
    %42 = vector.shape_cast %41 : vector<8xf32> to vector<8x1xf32>
    %43 = tpu.reciprocal %42 {approx = true} : vector<8x1xf32> -> vector<8x1xf32>
    %44 = vector.broadcast %43 : vector<8x1xf32> to vector<8x8xf32>
    %45 = arith.mulf %40, %44 : vector<8x8xf32>
    %cst_22 = arith.constant dense<0.000000e+00> : vector<8x8xf32>
    %46 = tpu.matmul %45, %35, %cst_22 {dimension_numbers = #tpu.dot_dimension_numbers<[1], [0], [0], [1], [0, 0, 1, 1], [], []>} : vector<8x8xf32>, vector<8x8xf32>, vector<8x8xf32> -> vector<8x8xf32>
    %47 = vector.extract_strided_slice %16 {offsets = [0, 16], sizes = [8, 8], strides = [1, 1]} : vector<8x32xf32> to vector<8x8xf32>
    %48 = vector.extract_strided_slice %17 {offsets = [0, 16], sizes = [8, 8], strides = [1, 1]} : vector<8x32xf32> to vector<8x8xf32>
    %49 = vector.extract_strided_slice %18 {offsets = [0, 16], sizes = [8, 8], strides = [1, 1]} : vector<8x32xf32> to vector<8x8xf32>
    %cst_23 = arith.constant dense<0.000000e+00> : vector<8x8xf32>
    %50 = tpu.matmul %47, %48, %cst_23 {dimension_numbers = #tpu.dot_dimension_numbers<[1], [1], [0], [0], [0, 0, 1, 0], [], []>} : vector<8x8xf32>, vector<8x8xf32>, vector<8x8xf32> -> vector<8x8xf32>
    %cst_24 = arith.constant 0.353553385 : f32
    %51 = vector.broadcast %cst_24 : f32 to vector<8x8xf32>
    %52 = arith.mulf %50, %51 : vector<8x8xf32>
    %53 = arith.addf %52, %5 : vector<8x8xf32>
    %54 = math.exp %53 : vector<8x8xf32>
    %cst_25 = arith.constant dense<0.000000e+00> : vector<8xf32>
    %55 = vector.multi_reduction <add>, %54, %cst_25 [1] : vector<8x8xf32> to vector<8xf32>
    %56 = vector.shape_cast %55 : vector<8xf32> to vector<8x1xf32>
    %57 = tpu.reciprocal %56 {approx = true} : vector<8x1xf32> -> vector<8x1xf32>
    %58 = vector.broadcast %57 : vector<8x1xf32> to vector<8x8xf32>
    %59 = arith.mulf %54, %58 : vector<8x8xf32>
    %cst_26 = arith.constant dense<0.000000e+00> : vector<8x8xf32>
    %60 = tpu.matmul %59, %49, %cst_26 {dimension_numbers = #tpu.dot_dimension_numbers<[1], [0], [0], [1], [0, 0, 1, 1], [], []>} : vector<8x8xf32>, vector<8x8xf32>, vector<8x8xf32> -> vector<8x8xf32>
    %61 = vector.extract_strided_slice %16 {offsets = [0, 24], sizes = [8, 8], strides = [1, 1]} : vector<8x32xf32> to vector<8x8xf32>
    %62 = vector.extract_strided_slice %17 {offsets = [0, 24], sizes = [8, 8], strides = [1, 1]} : vector<8x32xf32> to vector<8x8xf32>
    %63 = vector.extract_strided_slice %18 {offsets = [0, 24], sizes = [8, 8], strides = [1, 1]} : vector<8x32xf32> to vector<8x8xf32>
    %cst_27 = arith.constant dense<0.000000e+00> : vector<8x8xf32>
    %64 = tpu.matmul %61, %62, %cst_27 {dimension_numbers = #tpu.dot_dimension_numbers<[1], [1], [0], [0], [0, 0, 1, 0], [], []>} : vector<8x8xf32>, vector<8x8xf32>, vector<8x8xf32> -> vector<8x8xf32>
    %cst_28 = arith.constant 0.353553385 : f32
    %65 = vector.broadcast %cst_28 : f32 to vector<8x8xf32>
    %66 = arith.mulf %64, %65 : vector<8x8xf32>
    %67 = arith.addf %66, %5 : vector<8x8xf32>
    %68 = math.exp %67 : vector<8x8xf32>
    %cst_29 = arith.constant dense<0.000000e+00> : vector<8xf32>
    %69 = vector.multi_reduction <add>, %68, %cst_29 [1] : vector<8x8xf32> to vector<8xf32>
    %70 = vector.shape_cast %69 : vector<8xf32> to vector<8x1xf32>
    %71 = tpu.reciprocal %70 {approx = true} : vector<8x1xf32> -> vector<8x1xf32>
    %72 = vector.broadcast %71 : vector<8x1xf32> to vector<8x8xf32>
    %73 = arith.mulf %68, %72 : vector<8x8xf32>
    %cst_30 = arith.constant dense<0.000000e+00> : vector<8x8xf32>
    %74 = tpu.matmul %73, %63, %cst_30 {dimension_numbers = #tpu.dot_dimension_numbers<[1], [0], [0], [1], [0, 0, 1, 1], [], []>} : vector<8x8xf32>, vector<8x8xf32>, vector<8x8xf32> -> vector<8x8xf32>
    %75 = tpu.concatenate %31, %45, %59, %73 in 0 : vector<8x8xf32>, vector<8x8xf32>, vector<8x8xf32>, vector<8x8xf32> -> vector<32x8xf32>
    %c0_31 = arith.constant 0 : index
    %c0_32 = arith.constant 0 : index
    %c0_33 = arith.constant 0 : index
    %76 = vector.load %arg8[%c0_31, %c0_32, %c0_33] : memref<1x32x8xf32, #tpu.memory_space<vmem>>, vector<1x32x8xf32>
    %77 = vector.shape_cast %76 : vector<1x32x8xf32> to vector<32x8xf32>
    %78 = vector.shape_cast %75 : vector<32x8xf32> to vector<1x32x8xf32>
    tpu.vector_store %arg8[%c0_31, %c0_32, %c0_33], %78 {strides = array<i32>} : memref<1x32x8xf32, #tpu.memory_space<vmem>>, vector<1x32x8xf32>,
    %79 = tpu.concatenate %32, %46, %60, %74 in 1 : vector<8x8xf32>, vector<8x8xf32>, vector<8x8xf32>, vector<8x8xf32> -> vector<8x32xf32>
    %80 = arith.truncf %79 : vector<8x32xf32> to vector<8x32xbf16>
    %81 = vector.extract_strided_slice %8 {offsets = [0, 96], sizes = [32, 32], strides = [1, 1]} : vector<32x384xbf16> to vector<32x32xbf16>
    %cst_34 = arith.constant dense<0.000000e+00> : vector<8x32xf32>
    %82 = tpu.matmul %80, %81, %cst_34 {dimension_numbers = #tpu.dot_dimension_numbers<[1], [0], [0], [1], [0, 0, 1, 1], [], []>} : vector<8x32xbf16>, vector<32x32xbf16>, vector<8x32xf32> -> vector<8x32xf32>
    %83 = vector.extract_strided_slice %9 {offsets = [1, 0], sizes = [1, 32], strides = [1, 1]} : vector<16x128xf32> to vector<1x32xf32>
    %84 = vector.broadcast %83 : vector<1x32xf32> to vector<8x32xf32>
    %85 = arith.addf %82, %84 : vector<8x32xf32>
    %86 = arith.addf %85, %1 : vector<8x32xf32>
    %cst_35 = arith.constant dense<0.000000e+00> : vector<8xf32>
    %87 = vector.multi_reduction <add>, %86, %cst_35 [1] : vector<8x32xf32> to vector<8xf32>
    %88 = vector.shape_cast %87 : vector<8xf32> to vector<8x1xf32>
    %cst_36 = arith.constant 3.200000e+01 : f32
    %89 = vector.broadcast %cst_36 : f32 to vector<8x1xf32>
    %90 = arith.divf %88, %89 : vector<8x1xf32>
    %91 = vector.broadcast %90 : vector<8x1xf32> to vector<8x32xf32>
    %92 = arith.subf %86, %91 : vector<8x32xf32>
    %93 = arith.mulf %92, %92 : vector<8x32xf32>
    %cst_37 = arith.constant dense<0.000000e+00> : vector<8xf32>
    %94 = vector.multi_reduction <add>, %93, %cst_37 [1] : vector<8x32xf32> to vector<8xf32>
    %95 = vector.shape_cast %94 : vector<8xf32> to vector<8x1xf32>
    %cst_38 = arith.constant 3.200000e+01 : f32
    %96 = vector.broadcast %cst_38 : f32 to vector<8x1xf32>
    %97 = arith.divf %95, %96 : vector<8x1xf32>
    %98 = vector.broadcast %90 : vector<8x1xf32> to vector<8x32xf32>
    %99 = arith.subf %86, %98 : vector<8x32xf32>
    %cst_39 = arith.constant 9.99999974E-6 : f32
    %100 = vector.broadcast %cst_39 : f32 to vector<8x1xf32>
    %101 = arith.addf %97, %100 : vector<8x1xf32>
    %102 = math.rsqrt %101 : vector<8x1xf32>
    %103 = vector.broadcast %102 : vector<8x1xf32> to vector<8x32xf32>
    %104 = arith.mulf %99, %103 : vector<8x32xf32>
    %105 = vector.extract_strided_slice %9 {offsets = [2, 0], sizes = [1, 32], strides = [1, 1]} : vector<16x128xf32> to vector<1x32xf32>
    %106 = vector.broadcast %105 : vector<1x32xf32> to vector<8x32xf32>
    %107 = arith.mulf %104, %106 : vector<8x32xf32>
    %108 = vector.extract_strided_slice %9 {offsets = [3, 0], sizes = [1, 32], strides = [1, 1]} : vector<16x128xf32> to vector<1x32xf32>
    %109 = vector.broadcast %108 : vector<1x32xf32> to vector<8x32xf32>
    %110 = arith.addf %107, %109 : vector<8x32xf32>
    %111 = arith.truncf %110 : vector<8x32xf32> to vector<8x32xbf16>
    %112 = vector.extract_strided_slice %8 {offsets = [0, 128], sizes = [32, 32], strides = [1, 1]} : vector<32x384xbf16> to vector<32x32xbf16>
    %cst_40 = arith.constant dense<0.000000e+00> : vector<8x32xf32>
    %113 = tpu.matmul %111, %112, %cst_40 {dimension_numbers = #tpu.dot_dimension_numbers<[1], [0], [0], [1], [0, 0, 1, 1], [], []>} : vector<8x32xbf16>, vector<32x32xbf16>, vector<8x32xf32> -> vector<8x32xf32>
    %114 = vector.extract_strided_slice %9 {offsets = [4, 0], sizes = [1, 32], strides = [1, 1]} : vector<16x128xf32> to vector<1x32xf32>
    %115 = vector.broadcast %114 : vector<1x32xf32> to vector<8x32xf32>
    %116 = arith.addf %113, %115 : vector<8x32xf32>
    %117 = arith.truncf %3 : vector<8x32xf32> to vector<8x32xbf16>
    %118 = vector.extract_strided_slice %8 {offsets = [0, 160], sizes = [32, 64], strides = [1, 1]} : vector<32x384xbf16> to vector<32x64xbf16>
    %cst_41 = arith.constant dense<0.000000e+00> : vector<8x64xf32>
    %119 = tpu.matmul %117, %118, %cst_41 {dimension_numbers = #tpu.dot_dimension_numbers<[1], [0], [0], [1], [0, 0, 1, 1], [], []>} : vector<8x32xbf16>, vector<32x64xbf16>, vector<8x64xf32> -> vector<8x64xf32>
    %120 = vector.extract_strided_slice %9 {offsets = [5, 0], sizes = [1, 64], strides = [1, 1]} : vector<16x128xf32> to vector<1x64xf32>
    %121 = vector.broadcast %120 : vector<1x64xf32> to vector<8x64xf32>
    %122 = arith.addf %119, %121 : vector<8x64xf32>
    %123 = vector.extract_strided_slice %122 {offsets = [0, 0], sizes = [8, 32], strides = [1, 1]} : vector<8x64xf32> to vector<8x32xf32>
    %124 = vector.extract_strided_slice %122 {offsets = [0, 32], sizes = [8, 32], strides = [1, 1]} : vector<8x64xf32> to vector<8x32xf32>
    %125 = vector.extract_strided_slice %116 {offsets = [0, 0], sizes = [8, 8], strides = [1, 1]} : vector<8x32xf32> to vector<8x8xf32>
    %126 = vector.extract_strided_slice %123 {offsets = [0, 0], sizes = [8, 8], strides = [1, 1]} : vector<8x32xf32> to vector<8x8xf32>
    %127 = vector.extract_strided_slice %124 {offsets = [0, 0], sizes = [8, 8], strides = [1, 1]} : vector<8x32xf32> to vector<8x8xf32>
    %cst_42 = arith.constant dense<0.000000e+00> : vector<8x8xf32>
    %128 = tpu.matmul %125, %126, %cst_42 {dimension_numbers = #tpu.dot_dimension_numbers<[1], [1], [0], [0], [0, 0, 1, 0], [], []>} : vector<8x8xf32>, vector<8x8xf32>, vector<8x8xf32> -> vector<8x8xf32>
    %cst_43 = arith.constant 0.353553385 : f32
    %129 = vector.broadcast %cst_43 : f32 to vector<8x8xf32>
    %130 = arith.mulf %128, %129 : vector<8x8xf32>
    %131 = arith.addf %130, %7 : vector<8x8xf32>
    %132 = math.exp %131 : vector<8x8xf32>
    %cst_44 = arith.constant dense<0.000000e+00> : vector<8xf32>
    %133 = vector.multi_reduction <add>, %132, %cst_44 [1] : vector<8x8xf32> to vector<8xf32>
    %134 = vector.shape_cast %133 : vector<8xf32> to vector<8x1xf32>
    %135 = tpu.reciprocal %134 {approx = true} : vector<8x1xf32> -> vector<8x1xf32>
    %136 = vector.broadcast %135 : vector<8x1xf32> to vector<8x8xf32>
    %137 = arith.mulf %132, %136 : vector<8x8xf32>
    %cst_45 = arith.constant dense<0.000000e+00> : vector<8x8xf32>
    %138 = tpu.matmul %137, %127, %cst_45 {dimension_numbers = #tpu.dot_dimension_numbers<[1], [0], [0], [1], [0, 0, 1, 1], [], []>} : vector<8x8xf32>, vector<8x8xf32>, vector<8x8xf32> -> vector<8x8xf32>
    %139 = vector.extract_strided_slice %116 {offsets = [0, 8], sizes = [8, 8], strides = [1, 1]} : vector<8x32xf32> to vector<8x8xf32>
    %140 = vector.extract_strided_slice %123 {offsets = [0, 8], sizes = [8, 8], strides = [1, 1]} : vector<8x32xf32> to vector<8x8xf32>
    %141 = vector.extract_strided_slice %124 {offsets = [0, 8], sizes = [8, 8], strides = [1, 1]} : vector<8x32xf32> to vector<8x8xf32>
    %cst_46 = arith.constant dense<0.000000e+00> : vector<8x8xf32>
    %142 = tpu.matmul %139, %140, %cst_46 {dimension_numbers = #tpu.dot_dimension_numbers<[1], [1], [0], [0], [0, 0, 1, 0], [], []>} : vector<8x8xf32>, vector<8x8xf32>, vector<8x8xf32> -> vector<8x8xf32>
    %cst_47 = arith.constant 0.353553385 : f32
    %143 = vector.broadcast %cst_47 : f32 to vector<8x8xf32>
    %144 = arith.mulf %142, %143 : vector<8x8xf32>
    %145 = arith.addf %144, %7 : vector<8x8xf32>
    %146 = math.exp %145 : vector<8x8xf32>
    %cst_48 = arith.constant dense<0.000000e+00> : vector<8xf32>
    %147 = vector.multi_reduction <add>, %146, %cst_48 [1] : vector<8x8xf32> to vector<8xf32>
    %148 = vector.shape_cast %147 : vector<8xf32> to vector<8x1xf32>
    %149 = tpu.reciprocal %148 {approx = true} : vector<8x1xf32> -> vector<8x1xf32>
    %150 = vector.broadcast %149 : vector<8x1xf32> to vector<8x8xf32>
    %151 = arith.mulf %146, %150 : vector<8x8xf32>
    %cst_49 = arith.constant dense<0.000000e+00> : vector<8x8xf32>
    %152 = tpu.matmul %151, %141, %cst_49 {dimension_numbers = #tpu.dot_dimension_numbers<[1], [0], [0], [1], [0, 0, 1, 1], [], []>} : vector<8x8xf32>, vector<8x8xf32>, vector<8x8xf32> -> vector<8x8xf32>
    %153 = vector.extract_strided_slice %116 {offsets = [0, 16], sizes = [8, 8], strides = [1, 1]} : vector<8x32xf32> to vector<8x8xf32>
    %154 = vector.extract_strided_slice %123 {offsets = [0, 16], sizes = [8, 8], strides = [1, 1]} : vector<8x32xf32> to vector<8x8xf32>
    %155 = vector.extract_strided_slice %124 {offsets = [0, 16], sizes = [8, 8], strides = [1, 1]} : vector<8x32xf32> to vector<8x8xf32>
    %cst_50 = arith.constant dense<0.000000e+00> : vector<8x8xf32>
    %156 = tpu.matmul %153, %154, %cst_50 {dimension_numbers = #tpu.dot_dimension_numbers<[1], [1], [0], [0], [0, 0, 1, 0], [], []>} : vector<8x8xf32>, vector<8x8xf32>, vector<8x8xf32> -> vector<8x8xf32>
    %cst_51 = arith.constant 0.353553385 : f32
    %157 = vector.broadcast %cst_51 : f32 to vector<8x8xf32>
    %158 = arith.mulf %156, %157 : vector<8x8xf32>
    %159 = arith.addf %158, %7 : vector<8x8xf32>
    %160 = math.exp %159 : vector<8x8xf32>
    %cst_52 = arith.constant dense<0.000000e+00> : vector<8xf32>
    %161 = vector.multi_reduction <add>, %160, %cst_52 [1] : vector<8x8xf32> to vector<8xf32>
    %162 = vector.shape_cast %161 : vector<8xf32> to vector<8x1xf32>
    %163 = tpu.reciprocal %162 {approx = true} : vector<8x1xf32> -> vector<8x1xf32>
    %164 = vector.broadcast %163 : vector<8x1xf32> to vector<8x8xf32>
    %165 = arith.mulf %160, %164 : vector<8x8xf32>
    %cst_53 = arith.constant dense<0.000000e+00> : vector<8x8xf32>
    %166 = tpu.matmul %165, %155, %cst_53 {dimension_numbers = #tpu.dot_dimension_numbers<[1], [0], [0], [1], [0, 0, 1, 1], [], []>} : vector<8x8xf32>, vector<8x8xf32>, vector<8x8xf32> -> vector<8x8xf32>
    %167 = vector.extract_strided_slice %116 {offsets = [0, 24], sizes = [8, 8], strides = [1, 1]} : vector<8x32xf32> to vector<8x8xf32>
    %168 = vector.extract_strided_slice %123 {offsets = [0, 24], sizes = [8, 8], strides = [1, 1]} : vector<8x32xf32> to vector<8x8xf32>
    %169 = vector.extract_strided_slice %124 {offsets = [0, 24], sizes = [8, 8], strides = [1, 1]} : vector<8x32xf32> to vector<8x8xf32>
    %cst_54 = arith.constant dense<0.000000e+00> : vector<8x8xf32>
    %170 = tpu.matmul %167, %168, %cst_54 {dimension_numbers = #tpu.dot_dimension_numbers<[1], [1], [0], [0], [0, 0, 1, 0], [], []>} : vector<8x8xf32>, vector<8x8xf32>, vector<8x8xf32> -> vector<8x8xf32>
    %cst_55 = arith.constant 0.353553385 : f32
    %171 = vector.broadcast %cst_55 : f32 to vector<8x8xf32>
    %172 = arith.mulf %170, %171 : vector<8x8xf32>
    %173 = arith.addf %172, %7 : vector<8x8xf32>
    %174 = math.exp %173 : vector<8x8xf32>
    %cst_56 = arith.constant dense<0.000000e+00> : vector<8xf32>
    %175 = vector.multi_reduction <add>, %174, %cst_56 [1] : vector<8x8xf32> to vector<8xf32>
    %176 = vector.shape_cast %175 : vector<8xf32> to vector<8x1xf32>
    %177 = tpu.reciprocal %176 {approx = true} : vector<8x1xf32> -> vector<8x1xf32>
    %178 = vector.broadcast %177 : vector<8x1xf32> to vector<8x8xf32>
    %179 = arith.mulf %174, %178 : vector<8x8xf32>
    %cst_57 = arith.constant dense<0.000000e+00> : vector<8x8xf32>
    %180 = tpu.matmul %179, %169, %cst_57 {dimension_numbers = #tpu.dot_dimension_numbers<[1], [0], [0], [1], [0, 0, 1, 1], [], []>} : vector<8x8xf32>, vector<8x8xf32>, vector<8x8xf32> -> vector<8x8xf32>
    %181 = tpu.concatenate %137, %151, %165, %179 in 0 : vector<8x8xf32>, vector<8x8xf32>, vector<8x8xf32>, vector<8x8xf32> -> vector<32x8xf32>
    %c0_58 = arith.constant 0 : index
    %c0_59 = arith.constant 0 : index
    %c0_60 = arith.constant 0 : index
    %182 = vector.load %arg9[%c0_58, %c0_59, %c0_60] : memref<1x32x8xf32, #tpu.memory_space<vmem>>, vector<1x32x8xf32>
    %183 = vector.shape_cast %182 : vector<1x32x8xf32> to vector<32x8xf32>
    %184 = vector.shape_cast %181 : vector<32x8xf32> to vector<1x32x8xf32>
    tpu.vector_store %arg9[%c0_58, %c0_59, %c0_60], %184 {strides = array<i32>} : memref<1x32x8xf32, #tpu.memory_space<vmem>>, vector<1x32x8xf32>,
    %185 = tpu.concatenate %138, %152, %166, %180 in 1 : vector<8x8xf32>, vector<8x8xf32>, vector<8x8xf32>, vector<8x8xf32> -> vector<8x32xf32>
    %186 = arith.truncf %185 : vector<8x32xf32> to vector<8x32xbf16>
    %187 = vector.extract_strided_slice %8 {offsets = [0, 224], sizes = [32, 32], strides = [1, 1]} : vector<32x384xbf16> to vector<32x32xbf16>
    %cst_61 = arith.constant dense<0.000000e+00> : vector<8x32xf32>
    %188 = tpu.matmul %186, %187, %cst_61 {dimension_numbers = #tpu.dot_dimension_numbers<[1], [0], [0], [1], [0, 0, 1, 1], [], []>} : vector<8x32xbf16>, vector<32x32xbf16>, vector<8x32xf32> -> vector<8x32xf32>
    %189 = vector.extract_strided_slice %9 {offsets = [6, 0], sizes = [1, 32], strides = [1, 1]} : vector<16x128xf32> to vector<1x32xf32>
    %190 = vector.broadcast %189 : vector<1x32xf32> to vector<8x32xf32>
    %191 = arith.addf %188, %190 : vector<8x32xf32>
    %192 = arith.addf %191, %110 : vector<8x32xf32>
    %cst_62 = arith.constant dense<0.000000e+00> : vector<8xf32>
    %193 = vector.multi_reduction <add>, %192, %cst_62 [1] : vector<8x32xf32> to vector<8xf32>
    %194 = vector.shape_cast %193 : vector<8xf32> to vector<8x1xf32>
    %cst_63 = arith.constant 3.200000e+01 : f32
    %195 = vector.broadcast %cst_63 : f32 to vector<8x1xf32>
    %196 = arith.divf %194, %195 : vector<8x1xf32>
    %197 = vector.broadcast %196 : vector<8x1xf32> to vector<8x32xf32>
    %198 = arith.subf %192, %197 : vector<8x32xf32>
    %199 = arith.mulf %198, %198 : vector<8x32xf32>
    %cst_64 = arith.constant dense<0.000000e+00> : vector<8xf32>
    %200 = vector.multi_reduction <add>, %199, %cst_64 [1] : vector<8x32xf32> to vector<8xf32>
    %201 = vector.shape_cast %200 : vector<8xf32> to vector<8x1xf32>
    %cst_65 = arith.constant 3.200000e+01 : f32
    %202 = vector.broadcast %cst_65 : f32 to vector<8x1xf32>
    %203 = arith.divf %201, %202 : vector<8x1xf32>
    %204 = vector.broadcast %196 : vector<8x1xf32> to vector<8x32xf32>
    %205 = arith.subf %192, %204 : vector<8x32xf32>
    %cst_66 = arith.constant 9.99999974E-6 : f32
    %206 = vector.broadcast %cst_66 : f32 to vector<8x1xf32>
    %207 = arith.addf %203, %206 : vector<8x1xf32>
    %208 = math.rsqrt %207 : vector<8x1xf32>
    %209 = vector.broadcast %208 : vector<8x1xf32> to vector<8x32xf32>
    %210 = arith.mulf %205, %209 : vector<8x32xf32>
    %211 = vector.extract_strided_slice %9 {offsets = [7, 0], sizes = [1, 32], strides = [1, 1]} : vector<16x128xf32> to vector<1x32xf32>
    %212 = vector.broadcast %211 : vector<1x32xf32> to vector<8x32xf32>
    %213 = arith.mulf %210, %212 : vector<8x32xf32>
    %214 = vector.extract_strided_slice %9 {offsets = [8, 0], sizes = [1, 32], strides = [1, 1]} : vector<16x128xf32> to vector<1x32xf32>
    %215 = vector.broadcast %214 : vector<1x32xf32> to vector<8x32xf32>
    %216 = arith.addf %213, %215 : vector<8x32xf32>
    %217 = arith.truncf %216 : vector<8x32xf32> to vector<8x32xbf16>
    %218 = vector.extract_strided_slice %8 {offsets = [0, 256], sizes = [32, 64], strides = [1, 1]} : vector<32x384xbf16> to vector<32x64xbf16>
    %cst_67 = arith.constant dense<0.000000e+00> : vector<8x64xf32>
    %219 = tpu.matmul %217, %218, %cst_67 {dimension_numbers = #tpu.dot_dimension_numbers<[1], [0], [0], [1], [0, 0, 1, 1], [], []>} : vector<8x32xbf16>, vector<32x64xbf16>, vector<8x64xf32> -> vector<8x64xf32>
    %220 = vector.extract_strided_slice %9 {offsets = [9, 0], sizes = [1, 64], strides = [1, 1]} : vector<16x128xf32> to vector<1x64xf32>
    %221 = vector.broadcast %220 : vector<1x64xf32> to vector<8x64xf32>
    %222 = arith.addf %219, %221 : vector<8x64xf32>
    %cst_68 = arith.constant 0.000000e+00 : f32
    %223 = vector.broadcast %cst_68 : f32 to vector<8x64xf32>
    %224 = arith.maximumf %222, %223 : vector<8x64xf32>
    %225 = arith.truncf %224 : vector<8x64xf32> to vector<8x64xbf16>
    %226 = vector.extract_strided_slice %8 {offsets = [0, 320], sizes = [32, 64], strides = [1, 1]} : vector<32x384xbf16> to vector<32x64xbf16>
    %cst_69 = arith.constant dense<0.000000e+00> : vector<8x32xf32>
    %227 = tpu.matmul %225, %226, %cst_69 {dimension_numbers = #tpu.dot_dimension_numbers<[1], [1], [0], [0], [0, 0, 1, 0], [], []>} : vector<8x64xbf16>, vector<32x64xbf16>, vector<8x32xf32> -> vector<8x32xf32>
    %228 = vector.extract_strided_slice %9 {offsets = [10, 0], sizes = [1, 32], strides = [1, 1]} : vector<16x128xf32> to vector<1x32xf32>
    %229 = vector.broadcast %228 : vector<1x32xf32> to vector<8x32xf32>
    %230 = arith.addf %227, %229 : vector<8x32xf32>
    %231 = arith.addf %230, %216 : vector<8x32xf32>
    %cst_70 = arith.constant dense<0.000000e+00> : vector<8xf32>
    %232 = vector.multi_reduction <add>, %231, %cst_70 [1] : vector<8x32xf32> to vector<8xf32>
    %233 = vector.shape_cast %232 : vector<8xf32> to vector<8x1xf32>
    %cst_71 = arith.constant 3.200000e+01 : f32
    %234 = vector.broadcast %cst_71 : f32 to vector<8x1xf32>
    %235 = arith.divf %233, %234 : vector<8x1xf32>
    %236 = vector.broadcast %235 : vector<8x1xf32> to vector<8x32xf32>
    %237 = arith.subf %231, %236 : vector<8x32xf32>
    %238 = arith.mulf %237, %237 : vector<8x32xf32>
    %cst_72 = arith.constant dense<0.000000e+00> : vector<8xf32>
    %239 = vector.multi_reduction <add>, %238, %cst_72 [1] : vector<8x32xf32> to vector<8xf32>
    %240 = vector.shape_cast %239 : vector<8xf32> to vector<8x1xf32>
    %cst_73 = arith.constant 3.200000e+01 : f32
    %241 = vector.broadcast %cst_73 : f32 to vector<8x1xf32>
    %242 = arith.divf %240, %241 : vector<8x1xf32>
    %243 = vector.broadcast %235 : vector<8x1xf32> to vector<8x32xf32>
    %244 = arith.subf %231, %243 : vector<8x32xf32>
    %cst_74 = arith.constant 9.99999974E-6 : f32
    %245 = vector.broadcast %cst_74 : f32 to vector<8x1xf32>
    %246 = arith.addf %242, %245 : vector<8x1xf32>
    %247 = math.rsqrt %246 : vector<8x1xf32>
    %248 = vector.broadcast %247 : vector<8x1xf32> to vector<8x32xf32>
    %249 = arith.mulf %244, %248 : vector<8x32xf32>
    %250 = vector.extract_strided_slice %9 {offsets = [11, 0], sizes = [1, 32], strides = [1, 1]} : vector<16x128xf32> to vector<1x32xf32>
    %251 = vector.broadcast %250 : vector<1x32xf32> to vector<8x32xf32>
    %252 = arith.mulf %249, %251 : vector<8x32xf32>
    %253 = vector.extract_strided_slice %9 {offsets = [12, 0], sizes = [1, 32], strides = [1, 1]} : vector<16x128xf32> to vector<1x32xf32>
    %254 = vector.broadcast %253 : vector<1x32xf32> to vector<8x32xf32>
    %255 = arith.addf %252, %254 : vector<8x32xf32>
    %c0_75 = arith.constant 0 : index
    %c0_76 = arith.constant 0 : index
    %c0_77 = arith.constant 0 : index
    %256 = vector.load %arg7[%c0_75, %c0_76, %c0_77] : memref<1x8x32xf32, #tpu.memory_space<vmem>>, vector<1x8x32xf32>
    %257 = vector.shape_cast %256 : vector<1x8x32xf32> to vector<8x32xf32>
    %258 = vector.shape_cast %255 : vector<8x32xf32> to vector<1x8x32xf32>
    tpu.vector_store %arg7[%c0_75, %c0_76, %c0_77], %258 {strides = array<i32>} : memref<1x8x32xf32, #tpu.memory_space<vmem>>, vector<1x8x32xf32>,
    return
  }
  func.func @transform_0(%arg0: i32) -> (i32, i32, i32) {
    %c0_i32 = arith.constant 0 : i32
    %c0_i32_0 = arith.constant 0 : i32
    %c0_i32_1 = arith.constant 0 : i32
    return %arg0, %c0_i32, %c0_i32_0 : i32, i32, i32
  }
  func.func @transform_1(%arg0: i32) -> (i32, i32, i32) {
    %c0_i32 = arith.constant 0 : i32
    %c0_i32_0 = arith.constant 0 : i32
    %c0_i32_1 = arith.constant 0 : i32
    return %arg0, %c0_i32, %c0_i32_0 : i32, i32, i32
  }
  func.func @transform_2(%arg0: i32) -> (i32, i32, i32) {
    %c0_i32 = arith.constant 0 : i32
    %c0_i32_0 = arith.constant 0 : i32
    %c0_i32_1 = arith.constant 0 : i32
    return %arg0, %c0_i32, %c0_i32_0 : i32, i32, i32
  }
  func.func @transform_3(%arg0: i32) -> (i32, i32, i32) {
    %c0_i32 = arith.constant 0 : i32
    %c0_i32_0 = arith.constant 0 : i32
    %c0_i32_1 = arith.constant 0 : i32
    return %arg0, %c0_i32, %c0_i32_0 : i32, i32, i32
  }
  func.func @transform_4(%arg0: i32) -> (i32, i32) {
    %c0_i32 = arith.constant 0 : i32
    %c0_i32_0 = arith.constant 0 : i32
    %c0_i32_1 = arith.constant 0 : i32
    return %c0_i32, %c0_i32_0 : i32, i32
  }
  func.func @transform_5(%arg0: i32) -> (i32, i32) {
    %c0_i32 = arith.constant 0 : i32
    %c0_i32_0 = arith.constant 0 : i32
    %c0_i32_1 = arith.constant 0 : i32
    return %c0_i32, %c0_i32_0 : i32, i32
  }
  func.func @transform_6(%arg0: i32) -> (i32, i32, i32) {
    %c0_i32 = arith.constant 0 : i32
    %c0_i32_0 = arith.constant 0 : i32
    %c0_i32_1 = arith.constant 0 : i32
    return %arg0, %c0_i32, %c0_i32_0 : i32, i32, i32
  }
  func.func @transform_7(%arg0: i32) -> (i32, i32, i32) {
    %c0_i32 = arith.constant 0 : i32
    %c0_i32_0 = arith.constant 0 : i32
    %c0_i32_1 = arith.constant 0 : i32
    return %arg0, %c0_i32, %c0_i32_0 : i32, i32, i32
  }
  func.func @transform_8(%arg0: i32) -> (i32, i32, i32) {
    %c0_i32 = arith.constant 0 : i32
    %c0_i32_0 = arith.constant 0 : i32
    %c0_i32_1 = arith.constant 0 : i32
    return %arg0, %c0_i32, %c0_i32_0 : i32, i32, i32
  }
}

</mosaic_0001>

<bundles_post_ra>
// kernel: decoder_layer.1
= control target key start
LH: loop header
LB: loop body
LE: loop exit
PB: predicated region body
PF: predicated region fallthrough
CT: control target
= control target key end

     0   :  { %s3775_s0 = inlined_call_operand.hbm [shape: f32[2,8,32], index: 0, kind: input, shape index: {}]   ;;  %s3776_s1 = inlined_call_operand.hbm [shape: f32[2,8,32], index: 1, kind: input, shape index: {}]   ;;  %s3777_s2 = inlined_call_operand.vmem [shape: f32[2,8,8], index: 2, kind: input, shape index: {}]   ;;  %s3778_s3 = inlined_call_operand.vmem [shape: f32[2,8,8], index: 3, kind: input, shape index: {}]   ;;  %s3779_s4 = inlined_call_operand.vmem [shape: bf16[32,384], index: 4, kind: input, shape index: {}]   ;;  %s3780_s5 = inlined_call_operand.hbm [shape: f32[16,128], index: 5, kind: input, shape index: {}]   ;;  %s3781_s6 = inlined_call_operand.hbm [shape: f32[2,8,32], index: 6, kind: output, shape index: {0}]   ;;  %s3782_s7 = inlined_call_operand.hbm [shape: f32[2,32,8], index: 7, kind: output, shape index: {1}]   ;;  %s3783_s8 = inlined_call_operand.hbm [shape: f32[2,32,8], index: 8, kind: output, shape index: {2}]  }
   0x1   :  { %3801 = sst [smem:[#allocation21_spill]] %s3780_s5 }
   0x2   :  { %14 = vsyncpa [#allocation3], 0 }
   0x3   :  { %16 = vsyncpa [#allocation3 + $0x1], 0 }
   0x4   :  { %17 = vsyncpa [#allocation6], 0 }
   0x5   :  { %19 = vsyncpa [#allocation6 + $0x1], 0 }
   0x6   :  { %20 = vsyncpa [#allocation4], 0 }
   0x7   :  { %22 = vsyncpa [#allocation4 + $0x1], 0 }
   0x8   :  { %23 = vsyncpa [#allocation10], 0 }
   0x9   :  { %25 = vsyncpa [#allocation10 + $0x1], 0  ;;  %s3172_s27 = smov 0   ;;  %s3174_s28 = smov 0  }
   0xa   :  { %s3176_s29 = smov 0   ;;  %s3178_s30 = smov 0  }
   0xb LB: > { %3802 = sst [smem:[#allocation17_spill]] %s3095_s29  ;;  %s3193_s9 = sadd.s32 4294967295, %s3099_s30   ;;  %s3099_s30 = sphi %s3178_s30, %s3829_s30   ;;  %s3095_s29 = sphi %s3176_s29, %s3831_s29   ;;  %s3091_s28 = sphi %s3174_s28, %s3833_s28   ;;  %s3087_s27 = sphi %s3172_s27, %s3832_s27  }
   0xc   : > { %s3784_s10 = sadd.s32 4294967294, %s3099_s30   ;;  %p51_p0 = scmp.ne.s32.totalorder %s3091_s28, %s3087_s27 }
   0xd   : > { %p3789_p1 = scmp.eq.s32.totalorder %s3193_s9, 0  ;;  %p201_p3 = scmp.eq.s32.totalorder %s3784_s10, 1 }
   0xe   : > { %p2498_p5 = scmp.ge.s32.totalorder %s3099_s30, 1  ;;  %p260_p7 = scmp.lt.s32.totalorder %s3099_s30, 3 }
   0xf   : > { %p3204_p4 = por %p3789_p1, %p51_p0  ;;  %p3209_p6 = por %p201_p3, %p51_p0 }
  0x10   : > { %p3214_p8 = pnand %p2498_p5, %p260_p7  ;;  %s3101_s14 = smov [#allocation7]  }
  0x11   : > { %s3803_s11 = scalar_select %p3204_p4, 1, 0 }
  0x12   : > { %s3804_s12 = scalar_select %p3209_p6, 1, 0 }
  0x13   : > { %s3806_s13 = scalar_select %p3214_p8, 1, 0 }
  0x14   : > { %3805 = sst [smem:[#allocation18_spill]] %s3804_s12  ;;  %s275_s15 = sshll.u32 %s3101_s14, 4  ;;  %s276_s15 = int_to_ptr.vmem [resolvable:$true] %s275_s15 }
  0x15   : > { %p2766_p9 = pneg %p3214_p8  ;;  %s3228_s17 = sadd.s32 1, %s3099_s30  }
  0x16   : > { %3808 = sst [smem:[#allocation19_spill]] %s3228_s17  ;;  %s38_s18 = sadd.s32 1, %s3095_s29 }
  0x17   : > { %p3223_p11 = pnand %p2766_p9, %p3789_p1  ;;  %s35_s19 = ssub.s32 %s3099_s30, %s3228_s17 }
  0x18   : > { %s2900_s20 = scalar_lea.vmem %s276_s15, 256  ;;  %p2908_p5 = scmp.lt.s32.totalorder %s276_s15, %s276_s15 }
  0x19   : > { %p2891_p12 = pneg %p3223_p11  ;;  %p2901_p13 = scmp.ne.s32.totalorder %s276_s15, %s2900_s20 }
  0x1a   : > { %p2909_p7 = scmp.lt.s32.totalorder %s2900_s20, %s2900_s20 }
  0x1b   : > { %p2903_p0 = pnand %p2901_p13, %p2891_p12 }
  0x1c   : > { %p2910_p10 = por %p2909_p7, %p2908_p5 }
  0x1d   : > { %p2904_p3 = pneg %p2903_p0 }
  0x1f   : > { %p2911_p2 = pnand %p2910_p10, %p2904_p3 }
  0x21   : > { %2914 = shalt.err (!%p2911_p2)
}
  0x22   : > { %s3102_s21 = smov 128   ;;  %s3103_s22 = smov 8  }
  0x23   : > { %s3809_s5 = sld [smem:[#allocation21_spill]]  ;;  %p36_p9 = scmp.eq.s32.totalorder %s35_s19, 0 }
  0x24   : > { %p45_p12 = scmp.ne.s32.totalorder %s3095_s29, %s3091_s28  ;;  %p46_p10 = scmp.eq.s32.totalorder %s3099_s30, 0 }
  0x25   : > { %p2788_p2 = scmp.lt.s32.totalorder %s3099_s30, 2  ;;  %p3811_p0 = scmp.eq.s32.totalorder %s3193_s9, 1 }
  0x26   : > { %s3245_s25 = scalar_select %p36_p9, %s3095_s29, %s38_s18  }
  0x27   : > { %p47_p13 = por %p46_p10, %p45_p12  ;;  %p3249_p3 = por %p3811_p0, %p45_p12 }
  0x28   : > { %3810 = sst [smem:[#allocation20_spill]] %s3245_s25  ;;  %s289_s14 = sand.u32 1, %s3095_s29  }
  0x29   : > { %2769 = dma.hbm_to_vmem [thread:$0]  (!%p3223_p11), %s3809_s5, 256, %s276_s15, [#allocation6], %s3102_s21, %s3102_s21, %s3103_s22  }
  0x2a   : > { %s3812_s26 = scalar_select %p3249_p3, 1, 0 }
  0x2b   : > { %s2502_s20 = sshll.u32 %s3099_s30, 7  ;;  %s3255_s10 = sshll.u32 %s289_s14, 3 }
  0x2c   : > { %s3260_s15 = scalar_lea.hbm %s3775_s0, %s2502_s20  ;;  %s293_s18 = scalar_lea.vmem [#allocation2], %s3255_s10 }
  0x2d   : > { %s300_s19 = sshll.u32 %s293_s18, 4  ;;  %p3263_p11 = pnand %p2788_p2, %p47_p13  ;;  %s301_s19 = int_to_ptr.vmem [resolvable:$true] %s300_s19 }
  0x2e   : > { %s3270_s24 = scalar_lea.hbm %s3776_s1, %s2502_s20  ;;  %s290_s17 = scalar_lea.sflag [#allocation3], %s289_s14 }
  0x2f   : > { %s2915_s16 = scalar_lea.hbm %s3260_s15, 128  ;;  %p2917_p7 = pneg %p3263_p11 }
  0x30   : > { %p2916_p5 = scmp.ne.s32.totalorder %s3260_s15, %s2915_s16  ;;  %s2920_s25 = scalar_lea.hbm %s3775_s0, 256 }
  0x31   : > { %p2921_p10 = scmp.lt.s32.totalorder %s3260_s15, %s3775_s0  ;;  %p2922_p2 = scmp.lt.s32.totalorder %s2920_s25, %s2915_s16 }
  0x32   : > { %p2918_p9 = pnand %p2917_p7, %p2916_p5 }
  0x33   : > { %p2923_p13 = por %p2922_p2, %p2921_p10 }
  0x34   : > { %p2919_p12 = pneg %p2918_p9 }
  0x36   : > { %p2924_p0 = pnand %p2923_p13, %p2919_p12 }
  0x38   : > { %2927 = shalt.err (!%p2924_p0)
}
  0x39   : > { %s2928_s14 = scalar_lea.vmem %s301_s19, 128  ;;  %s3104_s20 = smov [#allocation2]  }
  0x3a   : > { %p2929_p1 = scmp.ne.s32.totalorder %s301_s19, %s2928_s14  ;;  %s2933_s22 = sshll.u32 %s3104_s20, 4  ;;  %s2934_s22 = int_to_ptr.vmem [resolvable:$false] %s2933_s22 }
  0x3b   : > { %s2935_s5 = scalar_lea.vmem %s2934_s22, 256  ;;  %p2936_p9 = scmp.lt.s32.totalorder %s301_s19, %s2934_s22 }
  0x3c   : > { %p2931_p6 = pnand %p2929_p1, %p2917_p7  ;;  %p2937_p3 = scmp.lt.s32.totalorder %s2935_s5, %s2928_s14 }
  0x3e   : > { %p2932_p5 = pneg %p2931_p6  ;;  %p2938_p4 = por %p2937_p3, %p2936_p9 }
  0x40   : > { %p2939_p8 = pnand %p2938_p4, %p2932_p5 }
  0x42   : > { %2942 = shalt.err (!%p2939_p8)
}
  0x43   : > { %2773 = dma.hbm_to_vmem [thread:$0]  (!%p3263_p11), %s3260_s15, 128, %s301_s19, %s290_s17  }
  0x44   : > { %s307_s29 = sand.u32 1, %s3099_s30   ;;  %s311_s12 = scalar_lea.vmem [#allocation5], %s3255_s10 }
  0x45   : > { %s318_s25 = sshll.u32 %s311_s12, 4  ;;  %s308_s23 = scalar_lea.sflag [#allocation6], %s307_s29  ;;  %s319_s25 = int_to_ptr.vmem [resolvable:$true] %s318_s25 }
  0x46   : > { %s2943_s16 = scalar_lea.hbm %s3270_s24, 128  ;;  %s2948_s20 = scalar_lea.hbm %s3776_s1, 256 }
  0x47   : > { %p2944_p1 = scmp.ne.s32.totalorder %s3270_s24, %s2943_s16  ;;  %p2949_p8 = scmp.lt.s32.totalorder %s3270_s24, %s3776_s1 }
  0x48   : > { %p2950_p3 = scmp.lt.s32.totalorder %s2948_s20, %s2943_s16 }
  0x49   : > { %p2946_p4 = pnand %p2944_p1, %p2917_p7 }
  0x4a   : > { %p2951_p12 = por %p2950_p3, %p2949_p8 }
  0x4b   : > { %p2947_p6 = pneg %p2946_p4 }
  0x4d   : > { %p2952_p10 = pnand %p2951_p12, %p2947_p6 }
  0x4f   : > { %2955 = shalt.err (!%p2952_p10)
}
  0x50   : > { %s2956_s10 = scalar_lea.vmem %s319_s25, 128  ;;  %s3105_s15 = smov [#allocation5]  }
  0x51   : > { %p2957_p2 = scmp.ne.s32.totalorder %s319_s25, %s2956_s10  ;;  %s2961_s19 = sshll.u32 %s3105_s15, 4  ;;  %s2962_s19 = int_to_ptr.vmem [resolvable:$false] %s2961_s19 }
  0x52   : > { %s2963_s17 = scalar_lea.vmem %s2962_s19, 256  ;;  %p2964_p5 = scmp.lt.s32.totalorder %s319_s25, %s2962_s19 }
  0x53   : > { %p2959_p13 = pnand %p2957_p2, %p2917_p7  ;;  %p2965_p9 = scmp.lt.s32.totalorder %s2963_s17, %s2956_s10 }
  0x55   : > { %p2960_p0 = pneg %p2959_p13  ;;  %p2966_p1 = por %p2965_p9, %p2964_p5 }
  0x57   : > { %p2967_p4 = pnand %p2966_p1, %p2960_p0 }
  0x59   : > { %2970 = shalt.err (!%p2967_p4)
}
  0x5a   : > { %2776 = dma.hbm_to_vmem [thread:$0]  (!%p3263_p11), %s3270_s24, 128, %s319_s25, %s308_s23  }
  0x5b   : > { %p3814_p6 = scmp.ne.s32.totalorder %s3806_s13, 0 }
  0x5c   : > { %s3315_s29 = sand.u32 (!%p3814_p6), 1, %s3091_s28   ;;  %p3815_p7 = scmp.ne.s32.totalorder (!%p3814_p6), %s3803_s11, 0 }
  0x5d   : > { %341 = sbr.rel (%p3814_p6) target bundleno = 4215 (0x1077), region = 44  ;;  %s3318_s12 = sshll.u32 (!%p3814_p6), %s3315_s29, 3 }
  0x5e   : > { %s344_s16 = scalar_lea.sflag (!%p3814_p6), [#allocation3], %s3315_s29  ;;  %s347_s18 = scalar_lea.vmem (!%p3814_p6), [#allocation2], %s3318_s12 }
  0x62   : > { %3066 = dma.done.wait (%p3815_p7), %s344_s16, 128  }
  0x63   : > { %3068 = vsyncadd (%p3815_p7), %s344_s16, 4294967168  ;;  %s3793_s13 = sand.u32 1, %s3193_s9   ;;  %s356_s24 = scalar_lea.vmem [#allocation5], %s3318_s12 }
  0x64   : > { %s353_s21 = scalar_lea.sflag [#allocation6], %s3793_s13 }
  0x65   : > { %3070 = dma.done.wait (%p3815_p7), %s353_s21, 128  }
  0x66   : > { %3072 = vsyncadd (%p3815_p7), %s353_s21, 4294967168  ;;  %p3816_p11 = scmp.eq.s32.totalorder %s3193_s9, 0 }
  0x68   : > { %3074 = dma.done.wait (%p3816_p11), [#allocation6], 256   ;;  %p3817_p8 = pmov %p3816_p11 }
  0x69   : > { %v3106_v0 = vmov 0.0   ;;  %vm3107_vm0 = vmmov 0   ;;  %v3347_v1 = vld [vmem:[%s3779_s4 + $0x18] ss:$12 sps:$4 sm:$0xff]   ;;  %v3353_v2 = vld [vmem:[%s3779_s4] ss:$12 sps:$4 sm:$0xff]   ;;  %v440_v5 = vlaneseq }
  0x6a   : > { %3076 = vsyncadd (%p3817_p8), [#allocation6], 4294967040  ;;  %2616 = vmatprep.subr.bf16.mxu0 %v3106_v0  ;;  %2620 = vmatprep.mubr.msk.bf16.mxu0 %vm3107_vm0, %v3106_v0  ;;  %v3355_v3 = vld [vmem:[%s347_s18] sm:$0xff]  ;;  %vm456_vm1 = vcmask 261120   ;;  %s3794_s20 = smov 64   ;;  %s3109_s22 = smov 96  }
  0x6b   : > { %2629 = vmatprep.subr.mxu1 %v3106_v0  ;;  %2631 = vmatprep.mubr.msk.f32.mxu1 %vm3107_vm0, %v3106_v0  ;;  %v439_v4 = vpack.c.bf16 %v3355_v3, %v3355_v3  ;;  %v3365_v6 = vshrl.u32 %v440_v5, 7  ;;  %v3368_v8 = vld [vmem:[#allocation7] sm:$0xff]  ;;  %s3110_s5 = smov 88   ;;  %s3111_s10 = smov 120   ;;  %vm503_vm2 = vcmask 64512   ;;  %vm1169_vm3 = vcmask 130048  }
  0x6c   : > { %2617 = vmatpush3.bf16.msra.mxu0 %v3347_v1  ;;  %s3112_s15 = smov 80   ;;  %s3113_s19 = smov 112   ;;  %vm1171_vm4 = vcmask 195584   ;;  %vm2179_vm5 = vcmask 523264  }
  0x6d   : > { %2618 = vmatprep.subr.bf16.mxu0 %v3106_v0  ;;  %v442_v7 = vsub.s32 0, %v3365_v6  ;;  %s3114_s17 = smov 72   ;;  %s3115_s16 = smov 104  }
  0x6e   : > { %p416_p3 = scmp.lt.s32.totalorder %s3193_s9, 1  ;;  %s3116_s14 = smov 56  }
  0x6f   : > { %v443_v9 = vrot.slane %v3368_v8, %v442_v7  ;;  %s3800_s11 = sshll.u32 %s3315_s29, 5  ;;  %s3119_s13 = smov 32  }
  0x70   : > { %2619 = vmatpush3.bf16.msra.mxu0 %v3353_v2  ;;  %s3400_s18 = scalar_select %p416_p3, %s3193_s9, 1 }
  0x71   : > { %2624 = vmatprep.subr.mxu0 %v3106_v0  ;;  %s3415_s25 = scalar_lea.vmem [#allocation9], %s3800_s11  ;;  %s3822_s11 = smov 64  }
  0x72   : > { %s2512_s21 = sshll.u32 %s3400_s18, 3  ;;  %p3824_p10 = scmp.ne.s32.totalorder %s3812_s26, 0 }
  0x73   : > { %2621 = vmatmul.mubr.msk.bf16.vlgmr.msra.gmra.mxu0 %vm456_vm1, %v439_v4  ;;  %s419_s23 = scalar_lea.vmem %s3777_s2, %s2512_s21 }
  0x74   : > { %2626 = vmatprep.mubr.msk.f32.mxu0 %vm3107_vm0, %v3106_v0  ;;  %v427_v17 = vld [vmem:[%s419_s23] sm:$0xff]  ;;  %s3117_s23 = smov 48  }
 0x133   : > { %v494_v10 = vpop.f32.mrf.mxu0 }
 0x134   : > { %v3373_v11 = vadd.f32 %v494_v10, %v443_v9  ;;  %v3462_v10 = vld [vmem:[%s3779_s4 + $0x1c] ss:$12 sps:$4 sm:$0xff]  }
 0x135   : > { %v2622_v12 = vpop.f32.mrf.mxu0 }
 0x136   : > { %587 = vrot.lane.b32.xlu1 %v3373_v11, %s3794_s20  ;;  %501 = vrot.lane.b32.xlu0 %v3373_v11, %s3109_s22  ;;  %s3796_s20 = smov 24  }
 0x137   : > { %v497_v13 = vpop.f32.mrf.mxu0 }
 0x139   : > { %v2623_v14 = vpop.f32.mrf.mxu0 }
 0x13a   : > { %665 = vrot.lane.b32.xlu1 %v3373_v11, %s3110_s5 }
 0x13e   : > { %663 = vrot.lane.b32.xlu1 %v3373_v11, %s3111_s10 }
 0x142   : > { %828 = vrot.lane.b32.xlu1 %v3373_v11, %s3112_s15 }
 0x146   : > { %826 = vrot.lane.b32.xlu1 %v3373_v11, %s3113_s19 }
 0x14a   : > { %991 = vrot.lane.b32.xlu1 %v3373_v11, %s3114_s17 }
 0x14e   : > { %989 = vrot.lane.b32.xlu1 %v3373_v11, %s3115_s16 }
 0x1a8   : > { %v588_v15 = vpop.permute.xlu1 %587  ;;  %v502_v16 = vpop.permute.xlu0 %501 }
 0x1a9   : > { %2625 = vmatpush3.xpose.msk.msra.mxu0 %vm503_vm2, %v502_v16  ;;  %2630 = vmatpush3.msra.mxu1 %v588_v15 }
 0x1aa   : > { %2639 = vmatprep.subr.mxu0 %v3106_v0  ;;  %2634 = vmatprep.subr.mxu1 %v3106_v0 }
 0x1ac   : > { %2627 = vmatmul.mubr.msk.f32.vlgmr.msra.gmra.mxu0 %vm503_vm2, %v3373_v11  ;;  %v666_v25 = vpop.permute.xlu1 %665 }
 0x1ad   : > { %2641 = vmatprep.mubr.msk.f32.mxu0 %vm3107_vm0, %v3106_v0 }
 0x1b0   : > { %v664_v27 = vpop.permute.xlu1 %663 }
 0x1b4   : > { %v829_v29 = vpop.permute.xlu1 %828 }
 0x1b8   : > { %v827_v32 = vpop.permute.xlu1 %826 }
 0x1bc   : > { %v992_v33 = vpop.permute.xlu1 %991 }
 0x1c0   : > { %v990_v34 = vpop.permute.xlu1 %989 }
 0x26c   : > { %v574_v18 = vpop.f32.mrf.mxu0 }
 0x26d   : > { %v578_v19 = vmul.f32 0.35355338, %v574_v18 }
 0x26e   : > { %v2628_v20 = vpop.f32.mrf.mxu0 }
 0x26f   : > { %v579_v21 = vadd.f32 %v578_v19, %v427_v17 }
 0x271   : > { %v580_v22 = vmul.f32 1.442695, %v579_v21 }
 0x273   : > { %2851 = vpow2.f32 %v580_v22 }
 0x280   : > { %v2852_v23 = vpop.eup %2851 }
 0x281   : > { %v582_v24 = vsel %vm503_vm2, %v2852_v23, 0.0 }
 0x282   : > { %583 = vadd.xlane.f32.xlu0 %v582_v24 }
 0x298   : > { %750 = vrot.lane.b32.xlu0 %v3373_v11, %s3116_s14  ;;  %s3118_s14 = smov 40  }
 0x30b   : > { %v584_v26 = vpop.xlane.xlu0 %583 }
 0x30c   : > { %2853 = vrcp.f32 %v584_v26  ;;  %v1176_v26 = vsub.s32 1, %v3365_v6 }
 0x30f   : > { %v751_v28 = vpop.permute.xlu0 %750 }
 0x310   : > { %2640 = vmatpush3.msra.mxu0 %v751_v28 }
 0x311   : > { %2649 = vmatprep.subr.mxu0 %v3106_v0 }
 0x319   : > { %v2854_v30 = vpop.eup %2853 }
 0x31a   : > { %v586_v31 = vmul.f32 %v2854_v30, %v2852_v23 }
 0x31c   : > { %2632 = vmatmul.mubr.msk.f32.vlgmr.msra.gmra.mxu1 %vm503_vm2, %v586_v31  ;;  %1152 = vst.msk [vmem:[%s3415_s25] sm:$0xff] %vm503_vm2, %v586_v31 }
 0x31d   : > { %2635 = vmatpush3.xpose.msk.msra.mxu1 %vm503_vm2, %v666_v25  ;;  %2636 = vmatprep.mubr.msk.f32.mxu1 %vm3107_vm0, %v3106_v0 }
 0x31e   : > { %2644 = vmatprep.subr.mxu1 %v3106_v0 }
 0x320   : > { %2637 = vmatmul.mubr.msk.f32.vlgmr.msra.gmra.mxu1 %vm503_vm2, %v664_v27  ;;  %v1177_v27 = vrot.slane %v3368_v8, %v1176_v26 }
 0x321   : > { %2645 = vmatpush3.xpose.msk.msra.mxu1 %vm503_vm2, %v829_v29  ;;  %2646 = vmatprep.mubr.msk.f32.mxu1 %vm3107_vm0, %v3106_v0 }
 0x322   : > { %2654 = vmatprep.subr.mxu1 %v3106_v0 }
 0x324   : > { %2647 = vmatmul.mubr.msk.f32.vlgmr.msra.gmra.mxu1 %vm503_vm2, %v827_v32 }
 0x325   : > { %2655 = vmatpush3.xpose.msk.msra.mxu1 %vm503_vm2, %v992_v33  ;;  %2656 = vmatprep.mubr.msk.f32.mxu1 %vm3107_vm0, %v3106_v0 }
 0x326   : > { %2664 = vmatprep.subr.bf16.mxu1 %v3106_v0 }
 0x328   : > { %2657 = vmatmul.mubr.msk.f32.vlgmr.msra.gmra.mxu1 %vm503_vm2, %v990_v34 }
 0x329   : > { %2668 = vmatprep.mubr.msk.bf16.mxu1 %vm3107_vm0, %v3106_v0 }
 0x3dc   : > { %v3436_v35 = vpop.f32.mrf.mxu1 }
 0x3de   : > { %v2633_v36 = vpop.f32.mrf.mxu1 }
 0x3df   : > { %v431_v36 = vld [vmem:[%s3779_s4 + $0xc] sm:$0xff] }
 0x3e0   : > { %v737_v37 = vpop.f32.mrf.mxu1 }
 0x3e1   : > { %v741_v38 = vmul.f32 0.35355338, %v737_v37 }
 0x3e2   : > { %v2638_v39 = vpop.f32.mrf.mxu1 }
 0x3e3   : > { %v742_v40 = vadd.f32 %v741_v38, %v427_v17 }
 0x3e4   : > { %v900_v41 = vpop.f32.mrf.mxu1 }
 0x3e5   : > { %v743_v42 = vmul.f32 1.442695, %v742_v40  ;;  %v904_v43 = vmul.f32 0.35355338, %v900_v41 }
 0x3e6   : > { %v2648_v44 = vpop.f32.mrf.mxu1 }
 0x3e7   : > { %2855 = vpow2.f32 %v743_v42  ;;  %v905_v45 = vadd.f32 %v904_v43, %v427_v17 }
 0x3e8   : > { %v1063_v46 = vpop.f32.mrf.mxu1 }
 0x3e9   : > { %v906_v47 = vmul.f32 1.442695, %v905_v45  ;;  %v1067_v48 = vmul.f32 0.35355338, %v1063_v46  ;;  %v426_v45 = vld [vmem:[%s356_s24] sm:$0xff] }
 0x3ea   : > { %v2658_v49 = vpop.f32.mrf.mxu1 }
 0x3eb   : > { %2857 = vpow2.f32 %v906_v47  ;;  %v1068_v50 = vadd.f32 %v1067_v48, %v427_v17  ;;  %v1308_v48 = vpack.c.bf16 %v426_v45, %v426_v45  ;;  %v1244_v49 = vsub.s32 2, %v3365_v6 }
 0x3ed   : > { %v1069_v51 = vmul.f32 1.442695, %v1068_v50  ;;  %v1249_v50 = vsub.s32 3, %v3365_v6 }
 0x3ef   : > { %2859 = vpow2.f32 %v1069_v51  ;;  %v1245_v51 = vrot.slane %v3368_v8, %v1244_v49 }
 0x3f4   : > { %v2856_v52 = vpop.eup %2855 }
 0x3f5   : > { %v745_v53 = vsel %vm503_vm2, %v2856_v52, 0.0 }
 0x3f6   : > { %746 = vadd.xlane.f32.xlu1 %v745_v53 }
 0x3f8   : > { %v2858_v54 = vpop.eup %2857 }
 0x3f9   : > { %v908_v55 = vsel %vm503_vm2, %v2858_v54, 0.0 }
 0x3fa   : > { %909 = vadd.xlane.f32.xlu0 %v908_v55 }
 0x3fc   : > { %v2860_v56 = vpop.eup %2859 }
 0x3fd   : > { %v1071_v57 = vsel %vm503_vm2, %v2860_v56, 0.0 }
 0x3fe   : > { %1072 = vadd.xlane.f32.xlu0 %v1071_v57 }
 0x407   : > { %913 = vrot.lane.b32.xlu1 %v3373_v11, %s3117_s23  ;;  %s3798_s23 = smov 8  }
 0x40b   : > { %1178 = vrot.lane.b32.xlu1 %v3353_v2, %s3119_s13 }
 0x414   : > { %1076 = vrot.lane.b32.xlu0 %v3373_v11, %s3118_s14  ;;  %s3797_s14 = smov 16  }
 0x418   : > { %1180 = vrot.lane.b32.xlu0 %v3347_v1, %s3119_s13 }
 0x47f   : > { %v747_v58 = vpop.xlane.xlu1 %746 }
 0x480   : > { %2861 = vrcp.f32 %v747_v58  ;;  %v1311_v58 = vsub.s32 5, %v3365_v6 }
 0x483   : > { %v910_v59 = vpop.xlane.xlu0 %909  ;;  %v914_v63 = vpop.permute.xlu1 %913 }
 0x484   : > { %2863 = vrcp.f32 %v910_v59  ;;  %v1312_v59 = vrot.slane %v3368_v8, %v1311_v58 }
 0x487   : > { %v1073_v60 = vpop.xlane.xlu0 %1072  ;;  %v1179_v12 = vpop.permute.xlu1 %1178 }
 0x488   : > { %2865 = vrcp.f32 %v1073_v60 }
 0x48b   : > { %v1077_v2 = vpop.permute.xlu0 %1076 }
 0x48d   : > { %v2862_v61 = vpop.eup %2861 }
 0x48e   : > { %v749_v62 = vmul.f32 %v2862_v61, %v2856_v52 }
 0x48f   : > { %v1181_v11 = vpop.permute.xlu0 %1180 }
 0x490   : > { %2642 = vmatmul.mubr.msk.f32.vlgmr.msra.gmra.mxu0 %vm503_vm2, %v749_v62  ;;  %1153 = vst.msk [vmem:[%s3415_s25 + $0x8] sm:$0xff] %vm503_vm2, %v749_v62  ;;  %2665 = vmatpush3.bf16.msra.mxu1 %v1181_v11 }
 0x491   : > { %v2864_v4 = vpop.eup %2863  ;;  %2650 = vmatpush3.msra.mxu0 %v914_v63  ;;  %2651 = vmatprep.mubr.msk.f32.mxu0 %vm3107_vm0, %v3106_v0 }
 0x492   : > { %2659 = vmatprep.subr.mxu0 %v3106_v0  ;;  %v912_v1 = vmul.f32 %v2864_v4, %v2858_v54  ;;  %2666 = vmatprep.subr.bf16.mxu1 %v3106_v0  ;;  %v1250_v54 = vrot.slane %v3368_v8, %v1249_v50 }
 0x494   : > { %2652 = vmatmul.mubr.msk.f32.vlgmr.msra.gmra.mxu0 %vm503_vm2, %v912_v1  ;;  %1154 = vst.msk [vmem:[%s3415_s25 + $0x10] sm:$0xff] %vm503_vm2, %v912_v1  ;;  %2667 = vmatpush3.bf16.msra.mxu1 %v1179_v12  ;;  %v1255_v1 = vsub.s32 4, %v3365_v6 }
 0x495   : > { %v2866_v5 = vpop.eup %2865  ;;  %2660 = vmatpush3.msra.mxu0 %v1077_v2  ;;  %2661 = vmatprep.mubr.msk.f32.mxu0 %vm3107_vm0, %v3106_v0 }
 0x496   : > { %v1075_v9 = vmul.f32 %v2866_v5, %v2860_v56  ;;  %2672 = vmatprep.subr.bf16.mxu0 %v3106_v0  ;;  %2680 = vmatprep.subr.bf16.mxu1 %v3106_v0  ;;  %v1256_v2 = vrot.slane %v3368_v8, %v1255_v1 }
 0x498   : > { %2662 = vmatmul.mubr.msk.f32.vlgmr.msra.gmra.mxu0 %vm503_vm2, %v1075_v9  ;;  %1155 = vst.msk [vmem:[%s3415_s25 + $0x18] sm:$0xff] %vm503_vm2, %v1075_v9 }
 0x499   : > { %2673 = vmatpush3.bf16.msra.mxu0 %v3462_v10  ;;  %2676 = vmatprep.mubr.msk.bf16.mxu0 %vm3107_vm0, %v3106_v0 }
 0x49a   : > { %2674 = vmatprep.subr.bf16.mxu0 %v3106_v0 }
 0x550   : > { %v822_v13 = vpop.f32.mrf.mxu0 }
 0x551   : > { %1157 = vrot.lane.b32.xlu0 %v822_v13, %s3798_s23  ;;  %s2561_s23 = sshll.u32 %s3193_s9, 9 }
 0x552   : > { %v2643_v14 = vpop.f32.mrf.mxu0 }
 0x554   : > { %v985_v15 = vpop.f32.mrf.mxu0 }
 0x555   : > { %1161 = vrot.lane.b32.xlu0 %v985_v15, %s3797_s14 }
 0x556   : > { %v2653_v16 = vpop.f32.mrf.mxu0 }
 0x558   : > { %v1148_v17 = vpop.f32.mrf.mxu0 }
 0x559   : > { %1165 = vrot.lane.b32.xlu0 %v1148_v17, %s3796_s20  ;;  %s3668_s20 = scalar_lea.hbm %s3782_s7, %s2561_s23 }
 0x55a   : > { %v2663_v18 = vpop.f32.mrf.mxu0 }
 0x5c3   : > { %v1158_v19 = vpop.permute.xlu0 %1157 }
 0x5c4   : > { %v1168_v21 = vsel %vm503_vm2, %v3436_v35, %v1158_v19  ;;  %v429_v35 = vld [vmem:[%s3779_s4] sm:$0xff] }
 0x5c5   : > { %v3495_v37 = vcombine.high %v429_v35, %v431_v36 }
 0x5c7   : > { %v1162_v20 = vpop.permute.xlu0 %1161  ;;  %2675 = vmatpush3.bf16.msra.mxu0 %v3495_v37 }
 0x5c8   : > { %v1170_v22 = vsel %vm1169_vm3, %v1168_v21, %v1162_v20  ;;  %2688 = vmatprep.subr.mxu0 %v3106_v0 }
 0x5cb   : > { %v1166_v23 = vpop.permute.xlu0 %1165 }
 0x5cc   : > { %v1172_v24 = vsel %vm1171_vm4, %v1170_v22, %v1166_v23 }
 0x5cd   : > { %v1173_v25 = vpack.c.bf16 %v1172_v24, %v1172_v24 }
 0x5cf   : > { %2669 = vmatmul.mubr.msk.bf16.vlgmr.msra.gmra.mxu1 %vm456_vm1, %v1173_v25 }
 0x5d0   : > { %2684 = vmatprep.mubr.msk.bf16.mxu1 %vm3107_vm0, %v3106_v0 }
 0x68f   : > { %v1221_v28 = vpop.f32.mrf.mxu1 }
 0x690   : > { %v1222_v29 = vadd.f32 %v1221_v28, %v1177_v27 }
 0x691   : > { %v2670_v30 = vpop.f32.mrf.mxu1 }
 0x692   : > { %v1227_v31 = vadd.f32 %v1222_v29, %v3355_v3 }
 0x693   : > { %v1224_v32 = vpop.f32.mrf.mxu1 }
 0x694   : > { %v1228_v33 = vsel %vm456_vm1, %v1227_v31, 0.0 }
 0x695   : > { %1229 = vadd.xlane.f32.xlu0 %v1228_v33  ;;  %v2671_v34 = vpop.f32.mrf.mxu1 }
 0x6ab   : > { %1315 = vrot.lane.b32.xlu0 %v3462_v10, %s3109_s22 }
 0x71e   : > { %v1230_v3 = vpop.xlane.xlu0 %1229 }
 0x71f   : > { %v1232_v38 = vmul.f32 0.03125, %v1230_v3 }
 0x721   : > { %v1233_v39 = vsub.f32 %v1227_v31, %v1232_v38 }
 0x722   : > { %v1316_v42 = vpop.permute.xlu0 %1315 }
 0x723   : > { %v1234_v40 = vmul.f32 %v1233_v39, %v1233_v39  ;;  %2681 = vmatpush3.bf16.msra.mxu1 %v1316_v42 }
 0x724   : > { %2682 = vmatprep.subr.bf16.mxu1 %v3106_v0 }
 0x725   : > { %v1235_v41 = vsel %vm456_vm1, %v1234_v40, 0.0 }
 0x726   : > { %1236 = vadd.xlane.f32.xlu1 %v1235_v41 }
 0x737   : > { %1313 = vrot.lane.b32.xlu1 %v3495_v37, %s3109_s22 }
 0x7af   : > { %v1237_v43 = vpop.xlane.xlu1 %1236 }
 0x7b0   : > { %v1238_v44 = vmul.f32 0.03125, %v1237_v43 }
 0x7b2   : > { %v1239_v46 = vadd.f32 1e-05, %v1238_v44 }
 0x7b3   : > { %v1314_v47 = vpop.permute.xlu1 %1313 }
 0x7b4   : > { %2867 = vrsqrt.f32 %v1239_v46  ;;  %2683 = vmatpush3.bf16.msra.mxu1 %v1314_v47 }
 0x7b5   : > { %2698 = vmatprep.subr.mxu1 %v3106_v0 }
 0x7b7   : > { %2685 = vmatmul.mubr.msk.bf16.vlgmr.msra.gmra.mxu1 %vm456_vm1, %v1308_v48 }
 0x7b8   : > { %2700 = vmatprep.mubr.msk.f32.mxu1 %vm3107_vm0, %v3106_v0 }
 0x7c1   : > { %v2868_v52 = vpop.eup %2867 }
 0x7c2   : > { %v1241_v53 = vmul.f32 %v2868_v52, %v1233_v39 }
 0x7c4   : > { %v1246_v55 = vmul.f32 %v1245_v51, %v1241_v53 }
 0x7c6   : > { %v3519_v56 = vadd.f32 %v1250_v54, %v1246_v55 }
 0x7c8   : > { %v1252_v57 = vpack.c.bf16 %v3519_v56, %v3519_v56 }
 0x7ca   : > { %2677 = vmatmul.mubr.msk.bf16.vlgmr.msra.gmra.mxu0 %vm456_vm1, %v1252_v57 }
 0x7cb   : > { %2690 = vmatprep.mubr.msk.f32.mxu0 %vm3107_vm0, %v3106_v0 }
 0x877   : > { %v1356_v60 = vpop.f32.mrf.mxu1 }
 0x878   : > { %v3528_v61 = vadd.f32 %v1356_v60, %v1312_v59 }
 0x879   : > { %v2686_v62 = vpop.f32.mrf.mxu1 }
 0x87a   : > { %1525 = vrot.lane.b32.xlu0 %v3528_v61, %s3111_s10  ;;  %2689 = vmatpush3.xpose.msk.msra.mxu0 %vm503_vm2, %v3528_v61 }
 0x87b   : > { %v1359_v63 = vpop.f32.mrf.mxu1  ;;  %2693 = vmatprep.subr.mxu0 %v3106_v0 }
 0x87d   : > { %v2687_v4 = vpop.f32.mrf.mxu1 }
 0x87e   : > { %1688 = vrot.lane.b32.xlu0 %v3528_v61, %s3113_s19 }
 0x882   : > { %1851 = vrot.lane.b32.xlu0 %v3528_v61, %s3115_s16 }
 0x88a   : > { %v1302_v5 = vpop.f32.mrf.mxu0 }
 0x88b   : > { %v1303_v9 = vadd.f32 %v1302_v5, %v1256_v2 }
 0x88c   : > { %v2678_v11 = vpop.f32.mrf.mxu0 }
 0x88d   : > { %1523 = vrot.lane.b32.xlu1 %v1303_v9, %s3111_s10  ;;  %2691 = vmatmul.mubr.msk.f32.vlgmr.msra.gmra.mxu0 %vm503_vm2, %v1303_v9  ;;  %s3818_s10 = sshll.u32 %s3315_s29, 5 }
 0x88e   : > { %v1305_v12 = vpop.f32.mrf.mxu0  ;;  %2695 = vmatprep.mubr.msk.f32.mxu0 %vm3107_vm0, %v3106_v0 }
 0x890   : > { %v2679_v13 = vpop.f32.mrf.mxu0 }
 0x891   : > { %1686 = vrot.lane.b32.xlu1 %v1303_v9, %s3113_s19  ;;  %s3587_s19 = scalar_lea.vmem [#allocation11], %s3818_s10  ;;  %s3823_s10 = sand.u32 1, %s3193_s9  }
 0x895   : > { %1849 = vrot.lane.b32.xlu1 %v1303_v9, %s3115_s16 }
 0x899   : > { %1447 = vrot.lane.b32.xlu1 %v3528_v61, %s3109_s22  ;;  %s423_s22 = scalar_lea.vmem %s3778_s3, %s2512_s21 }
 0x89a   : > { %v428_v21 = vld [vmem:[%s423_s22] sm:$0xff]  ;;  %s2291_s22 = sshll.u32 %s3415_s25, 4  ;;  %s3671_s22 = int_to_ptr.vmem [resolvable:$true] %s2291_s22 }
 0x8ec   : > { %v1526_v14 = vpop.permute.xlu0 %1525 }
 0x8ed   : > { %2699 = vmatpush3.xpose.msk.msra.mxu1 %vm503_vm2, %v1526_v14 }
 0x8ee   : > { %2708 = vmatprep.subr.mxu1 %v3106_v0 }
 0x8f0   : > { %v1689_v15 = vpop.permute.xlu0 %1688 }
 0x8f4   : > { %v1852_v18 = vpop.permute.xlu0 %1851 }
 0x8ff   : > { %v1524_v16 = vpop.permute.xlu1 %1523 }
 0x900   : > { %2701 = vmatmul.mubr.msk.f32.vlgmr.msra.gmra.mxu1 %vm503_vm2, %v1524_v16 }
 0x901   : > { %2709 = vmatpush3.xpose.msk.msra.mxu1 %vm503_vm2, %v1689_v15  ;;  %2710 = vmatprep.mubr.msk.f32.mxu1 %vm3107_vm0, %v3106_v0 }
 0x902   : > { %2718 = vmatprep.subr.mxu1 %v3106_v0 }
 0x903   : > { %v1687_v17 = vpop.permute.xlu1 %1686 }
 0x904   : > { %2711 = vmatmul.mubr.msk.f32.vlgmr.msra.gmra.mxu1 %vm503_vm2, %v1687_v17 }
 0x905   : > { %2719 = vmatpush3.xpose.msk.msra.mxu1 %vm503_vm2, %v1852_v18  ;;  %2720 = vmatprep.mubr.msk.f32.mxu1 %vm3107_vm0, %v3106_v0 }
 0x906   : > { %2728 = vmatprep.subr.bf16.mxu1 %v3106_v0 }
 0x907   : > { %v1850_v19 = vpop.permute.xlu1 %1849 }
 0x908   : > { %2721 = vmatmul.mubr.msk.f32.vlgmr.msra.gmra.mxu1 %vm503_vm2, %v1850_v19 }
 0x909   : > { %2732 = vmatprep.mubr.msk.bf16.mxu1 %vm3107_vm0, %v3106_v0 }
 0x90b   : > { %v1448_v20 = vpop.permute.xlu1 %1447 }
 0x90c   : > { %2694 = vmatpush3.msra.mxu0 %v1448_v20 }
 0x90d   : > { %2703 = vmatprep.subr.mxu0 %v3106_v0 }
 0x94d   : > { %v1434_v22 = vpop.f32.mrf.mxu0 }
 0x94e   : > { %v1438_v23 = vmul.f32 0.35355338, %v1434_v22 }
 0x94f   : > { %v2692_v24 = vpop.f32.mrf.mxu0 }
 0x950   : > { %v1439_v25 = vadd.f32 %v1438_v23, %v428_v21 }
 0x952   : > { %v1440_v27 = vmul.f32 1.442695, %v1439_v25 }
 0x954   : > { %2869 = vpow2.f32 %v1440_v27 }
 0x961   : > { %v2870_v28 = vpop.eup %2869 }
 0x962   : > { %v1442_v29 = vsel %vm503_vm2, %v2870_v28, 0.0 }
 0x963   : > { %1443 = vadd.xlane.f32.xlu0 %v1442_v29 }
 0x9c0   : > { %v1597_v30 = vpop.f32.mrf.mxu1 }
 0x9c1   : > { %v1601_v31 = vmul.f32 0.35355338, %v1597_v30 }
 0x9c2   : > { %v2702_v32 = vpop.f32.mrf.mxu1 }
 0x9c3   : > { %v1602_v33 = vadd.f32 %v1601_v31, %v428_v21 }
 0x9c4   : > { %v1760_v34 = vpop.f32.mrf.mxu1 }
 0x9c5   : > { %v1603_v35 = vmul.f32 1.442695, %v1602_v33  ;;  %v1764_v36 = vmul.f32 0.35355338, %v1760_v34 }
 0x9c6   : > { %v2712_v3 = vpop.f32.mrf.mxu1 }
 0x9c7   : > { %2871 = vpow2.f32 %v1603_v35  ;;  %v1765_v38 = vadd.f32 %v1764_v36, %v428_v21 }
 0x9c8   : > { %v1923_v39 = vpop.f32.mrf.mxu1 }
 0x9c9   : > { %v1766_v40 = vmul.f32 1.442695, %v1765_v38  ;;  %v1927_v41 = vmul.f32 0.35355338, %v1923_v39 }
 0x9ca   : > { %v2722_v42 = vpop.f32.mrf.mxu1 }
 0x9cb   : > { %2873 = vpow2.f32 %v1766_v40  ;;  %v1928_v43 = vadd.f32 %v1927_v41, %v428_v21  ;;  %v2849_v42 = vld [vmem:[%s3779_s4 + $0x20] ss:$12 sps:$4 sm:$0xff]  }
 0x9cd   : > { %v1929_v44 = vmul.f32 1.442695, %v1928_v43 }
 0x9cf   : > { %2875 = vpow2.f32 %v1929_v44 }
 0x9d4   : > { %v2872_v45 = vpop.eup %2871 }
 0x9d5   : > { %v1605_v46 = vsel %vm503_vm2, %v2872_v45, 0.0 }
 0x9d6   : > { %1606 = vadd.xlane.f32.xlu1 %v1605_v46 }
 0x9d8   : > { %v2874_v47 = vpop.eup %2873 }
 0x9d9   : > { %v1768_v48 = vsel %vm503_vm2, %v2874_v47, 0.0 }
 0x9da   : > { %1769 = vadd.xlane.f32.xlu0 %v1768_v48 }
 0x9dc   : > { %v2876_v51 = vpop.eup %2875 }
 0x9dd   : > { %v1931_v52 = vsel %vm503_vm2, %v2876_v51, 0.0 }
 0x9de   : > { %1932 = vadd.xlane.f32.xlu0 %v1931_v52 }
 0x9e7   : > { %1773 = vrot.lane.b32.xlu1 %v3528_v61, %s3112_s15  ;;  %s3820_s15 = smov 16  }
 0x9eb   : > { %1936 = vrot.lane.b32.xlu1 %v3528_v61, %s3114_s17  ;;  %s3821_s17 = smov 24  }
 0x9ec   : > { %v1444_v53 = vpop.xlane.xlu0 %1443 }
 0x9ed   : > { %2877 = vrcp.f32 %v1444_v53  ;;  %v3642_v53 = vld [vmem:[#allocation7 + $0x8] sm:$0xff] }
 0x9f4   : > { %1610 = vrot.lane.b32.xlu0 %v3528_v61, %s3110_s5  ;;  %s3819_s5 = smov 8  }
 0x9f8   : > { %2038 = vrot.lane.b32.xlu0 %v3462_v10, %s3119_s13 }
 0x9fa   : > { %v2878_v54 = vpop.eup %2877 }
 0x9fb   : > { %v1446_v55 = vmul.f32 %v2878_v54, %v2870_v28 }
 0x9fd   : > { %2696 = vmatmul.mubr.msk.f32.vlgmr.msra.gmra.mxu0 %vm503_vm2, %v1446_v55  ;;  %2012 = vst.msk [vmem:[%s3587_s19] sm:$0xff] %vm503_vm2, %v1446_v55 }
 0x9fe   : > { %2705 = vmatprep.mubr.msk.f32.mxu0 %vm3107_vm0, %v3106_v0 }
 0xa5f   : > { %v1607_v57 = vpop.xlane.xlu1 %1606 }
 0xa60   : > { %2879 = vrcp.f32 %v1607_v57  ;;  %v2107_v57 = vrot.slane %v3642_v53, %v442_v7  ;;  %v2174_v7 = vrot.slane %v3642_v53, %v1244_v49 }
 0xa63   : > { %v1770_v58 = vpop.xlane.xlu0 %1769  ;;  %v1774_v61 = vpop.permute.xlu1 %1773 }
 0xa64   : > { %2881 = vrcp.f32 %v1770_v58 }
 0xa67   : > { %v1933_v59 = vpop.xlane.xlu0 %1932  ;;  %v1937_v2 = vpop.permute.xlu1 %1936 }
 0xa68   : > { %2883 = vrcp.f32 %v1933_v59 }
 0xa6b   : > { %v1611_v10 = vpop.permute.xlu0 %1610 }
 0xa6c   : > { %2704 = vmatpush3.msra.mxu0 %v1611_v10 }
 0xa6d   : > { %v2880_v60 = vpop.eup %2879  ;;  %2713 = vmatprep.subr.mxu0 %v3106_v0 }
 0xa6e   : > { %v1609_v62 = vmul.f32 %v2880_v60, %v2872_v45 }
 0xa6f   : > { %v2039_v11 = vpop.permute.xlu0 %2038 }
 0xa70   : > { %2706 = vmatmul.mubr.msk.f32.vlgmr.msra.gmra.mxu0 %vm503_vm2, %v1609_v62  ;;  %2013 = vst.msk [vmem:[%s3587_s19 + $0x8] sm:$0xff] %vm503_vm2, %v1609_v62  ;;  %2729 = vmatpush3.bf16.msra.mxu1 %v2039_v11 }
 0xa71   : > { %v2882_v63 = vpop.eup %2881  ;;  %2714 = vmatpush3.msra.mxu0 %v1774_v61  ;;  %2715 = vmatprep.mubr.msk.f32.mxu0 %vm3107_vm0, %v3106_v0 }
 0xa72   : > { %2723 = vmatprep.subr.mxu0 %v3106_v0  ;;  %v1772_v4 = vmul.f32 %v2882_v63, %v2874_v47  ;;  %2730 = vmatprep.subr.bf16.mxu1 %v3106_v0 }
 0xa74   : > { %2716 = vmatmul.mubr.msk.f32.vlgmr.msra.gmra.mxu0 %vm503_vm2, %v1772_v4  ;;  %2014 = vst.msk [vmem:[%s3587_s19 + $0x10] sm:$0xff] %vm503_vm2, %v1772_v4 }
 0xa75   : > { %v2884_v5 = vpop.eup %2883  ;;  %2724 = vmatpush3.msra.mxu0 %v1937_v2  ;;  %2725 = vmatprep.mubr.msk.f32.mxu0 %vm3107_vm0, %v3106_v0 }
 0xa76   : > { %v1935_v9 = vmul.f32 %v2884_v5, %v2876_v51  ;;  %2736 = vmatprep.subr.bf16.mxu0 %v3106_v0  ;;  %v2101_v51 = vsub.s32 7, %v3365_v6 }
 0xa78   : > { %2726 = vmatmul.mubr.msk.f32.vlgmr.msra.gmra.mxu0 %vm503_vm2, %v1935_v9  ;;  %2015 = vst.msk [vmem:[%s3587_s19 + $0x18] sm:$0xff] %vm503_vm2, %v1935_v9  ;;  %v2102_v54 = vrot.slane %v3368_v8, %v2101_v51 }
 0xa79   : > { %2740 = vmatprep.mubr.msk.bf16.mxu0 %vm3107_vm0, %v3106_v0  ;;  %2737 = vmatpush3.bf16.msra.mxu0 %v2849_v42 }
 0xa7a   : > { %2738 = vmatprep.subr.bf16.mxu0 %v3106_v0 }
 0xabd   : > { %v1519_v12 = vpop.f32.mrf.mxu0 }
 0xabf   : > { %v2697_v13 = vpop.f32.mrf.mxu0 }
 0xb30   : > { %v1682_v14 = vpop.f32.mrf.mxu0 }
 0xb31   : > { %2017 = vrot.lane.b32.xlu1 %v1682_v14, %s3819_s5 }
 0xb32   : > { %v2707_v15 = vpop.f32.mrf.mxu0 }
 0xb34   : > { %v1845_v16 = vpop.f32.mrf.mxu0 }
 0xb35   : > { %2021 = vrot.lane.b32.xlu0 %v1845_v16, %s3820_s15  ;;  %s3675_s15 = scalar_lea.sflag [#allocation10], %s3823_s10 }
 0xb36   : > { %v2717_v17 = vpop.f32.mrf.mxu0 }
 0xb38   : > { %v2008_v18 = vpop.f32.mrf.mxu0 }
 0xb39   : > { %2036 = vrot.lane.b32.xlu0 %v3495_v37, %s3119_s13  ;;  %2025 = vrot.lane.b32.xlu1 %v2008_v18, %s3821_s17  ;;  %v2034_v37 = vsub.s32 6, %v3365_v6  ;;  %s2971_s17 = scalar_lea.vmem %s3671_s22, 512  ;;  %s3123_s13 = smov [#allocation9]  }
 0xb3a   : > { %v2727_v19 = vpop.f32.mrf.mxu0  ;;  %p2972_p12 = scmp.ne.s32.totalorder %s3671_s22, %s2971_s17  ;;  %s2975_s16 = sshll.u32 %s3123_s13, 4  ;;  %s2976_s16 = int_to_ptr.vmem [resolvable:$false] %s2975_s16 }
 0xb3b   : > { %v2035_v29 = vrot.slane %v3368_v8, %v2034_v37  ;;  %s2977_s18 = scalar_lea.vmem %s2976_s16, 1024  ;;  %p2978_p0 = scmp.lt.s32.totalorder %s3671_s22, %s2976_s16 }
 0xb3c   : > { %p2973_p2 = pnand %p2972_p12, %p3824_p10  ;;  %p2979_p5 = scmp.lt.s32.totalorder %s2977_s18, %s2971_s17 }
 0xb3e   : > { %p2974_p13 = pneg %p2973_p2  ;;  %p2980_p9 = por %p2979_p5, %p2978_p0 }
 0xb40   : > { %p2981_p1 = pnand %p2980_p9, %p2974_p13 }
 0xba3   : > { %v2018_v20 = vpop.permute.xlu1 %2017 }
 0xba4   : > { %v2028_v22 = vsel %vm503_vm2, %v1519_v12, %v2018_v20 }
 0xba7   : > { %v2022_v21 = vpop.permute.xlu0 %2021 }
 0xba8   : > { %v2029_v23 = vsel %vm1169_vm3, %v2028_v22, %v2022_v21 }
 0xbab   : > { %v2037_v24 = vpop.permute.xlu0 %2036  ;;  %v2026_v25 = vpop.permute.xlu1 %2025 }
 0xbac   : > { %v2030_v27 = vsel %vm1171_vm4, %v2029_v23, %v2026_v25  ;;  %2731 = vmatpush3.bf16.msra.mxu1 %v2037_v24 }
 0xbad   : > { %v2031_v28 = vpack.c.bf16 %v2030_v27, %v2030_v27  ;;  %2744 = vmatprep.subr.bf16.mxu1 %v3106_v0 }
 0xbaf   : > { %2733 = vmatmul.mubr.msk.bf16.vlgmr.msra.gmra.mxu1 %vm456_vm1, %v2031_v28 }
 0xbb0   : > { %2748 = vmatprep.mubr.msk.bf16.mxu1 %vm3107_vm0, %v3106_v0 }
 0xc6f   : > { %v2079_v30 = vpop.f32.mrf.mxu1 }
 0xc70   : > { %v2080_v31 = vadd.f32 %v2079_v30, %v2035_v29 }
 0xc71   : > { %v2734_v32 = vpop.f32.mrf.mxu1 }
 0xc72   : > { %v2085_v33 = vadd.f32 %v2080_v31, %v3519_v56  ;;  %v2850_v56 = vld [vmem:[%s3779_s4 + $0x8] ss:$12 sps:$4 sm:$0xff]  }
 0xc73   : > { %v2082_v34 = vpop.f32.mrf.mxu1  ;;  %2739 = vmatpush3.bf16.msra.mxu0 %v2850_v56 }
 0xc74   : > { %v2086_v35 = vsel %vm456_vm1, %v2085_v33, 0.0 }
 0xc75   : > { %2087 = vadd.xlane.f32.xlu1 %v2086_v35  ;;  %v2735_v36 = vpop.f32.mrf.mxu1 }
 0xc86   : > { %2175 = vrot.lane.b32.xlu1 %v2850_v56, %s3822_s11 }
 0xcfe   : > { %v2088_v3 = vpop.xlane.xlu1 %2087 }
 0xcff   : > { %v2089_v38 = vmul.f32 0.03125, %v2088_v3 }
 0xd01   : > { %v2090_v39 = vsub.f32 %v2085_v33, %v2089_v38 }
 0xd02   : > { %v2176_v48 = vpop.permute.xlu1 %2175 }
 0xd03   : > { %v2091_v40 = vmul.f32 %v2090_v39, %v2090_v39  ;;  %v2184_v52 = vsel %vm2179_vm5, %v2176_v48, 0 }
 0xd05   : > { %v2092_v41 = vsel %vm456_vm1, %v2091_v40, 0.0 }
 0xd06   : > { %2093 = vadd.xlane.f32.xlu0 %v2092_v41 }
 0xd1c   : > { %2177 = vrot.lane.b32.xlu0 %v2849_v42, %s3822_s11 }
 0xd8f   : > { %v2094_v43 = vpop.xlane.xlu0 %2093 }
 0xd90   : > { %v2095_v44 = vmul.f32 0.03125, %v2094_v43 }
 0xd92   : > { %v2096_v45 = vadd.f32 1e-05, %v2095_v44 }
 0xd93   : > { %v2178_v46 = vpop.permute.xlu0 %2177 }
 0xd94   : > { %2885 = vrsqrt.f32 %v2096_v45  ;;  %v2187_v47 = vsel %vm2179_vm5, %v2178_v46, 0 }
 0xd95   : > { %2745 = vmatpush3.bf16.xpose.msra.mxu1 %v2187_v47 }
 0xd96   : > { %2746 = vmatprep.subr.bf16.mxu1 %v3106_v0  ;;  %v2113_v0 = vrot.slane %v3642_v53, %v1176_v26 }
 0xd9d   : > { %2747 = vmatpush3.bf16.xpose.msra.mxu1 %v2184_v52 }
 0xda1   : > { %v2886_v55 = vpop.eup %2885 }
 0xda2   : > { %v2098_v58 = vmul.f32 %v2886_v55, %v2090_v39 }
 0xda4   : > { %v2103_v59 = vmul.f32 %v2102_v54, %v2098_v58 }
 0xda6   : > { %v2108_v10 = vadd.f32 %v2107_v57, %v2103_v59 }
 0xda8   : > { %v2109_v60 = vpack.c.bf16 %v2108_v10, %v2108_v10 }
 0xdaa   : > { %2741 = vmatmul.mubr.msk.bf16.vlgmr.msra.gmra.mxu0 %vm456_vm1, %v2109_v60 }
 0xe6a   : > { %v2163_v61 = vpop.f32.mrf.mxu0 }
 0xe6b   : > { %v2164_v62 = vadd.f32 %v2163_v61, %v2113_v0 }
 0xe6c   : > { %v2742_v63 = vpop.f32.mrf.mxu0 }
 0xe6d   : > { %v2169_v8 = vmax.f32 %v2164_v62, 0.0 }
 0xe6e   : > { %v2166_v4 = vpop.f32.mrf.mxu0 }
 0xe6f   : > { %v2170_v2 = vpack.c.bf16 %v2169_v8, %v2169_v8 }
 0xe70   : > { %v2743_v5 = vpop.f32.mrf.mxu0 }
 0xe71   : > { %2749 = vmatmul.mubr.msk.bf16.vlgmr.msra.gmra.mxu1 %vm2179_vm5, %v2170_v2 }
 0xf31   : > { %v2223_v9 = vpop.f32.mrf.mxu1 }
 0xf32   : > { %v2224_v11 = vadd.f32 %v2223_v9, %v2174_v7 }
 0xf33   : > { %v2750_v12 = vpop.f32.mrf.mxu1 }
 0xf34   : > { %v2229_v26 = vadd.f32 %v2224_v11, %v2108_v10 }
 0xf35   : > { %v2226_v13 = vpop.f32.mrf.mxu1 }
 0xf36   : > { %v2230_v14 = vsel %vm456_vm1, %v2229_v26, 0.0 }
 0xf37   : > { %2231 = vadd.xlane.f32.xlu1 %v2230_v14  ;;  %v2751_v15 = vpop.f32.mrf.mxu1 }
 0xfc0   : > { %v2232_v16 = vpop.xlane.xlu1 %2231 }
 0xfc1   : > { %v2233_v17 = vmul.f32 0.03125, %v2232_v16 }
 0xfc3   : > { %v3657_v18 = vsub.f32 %v2229_v26, %v2233_v17 }
 0xfc5   : > { %v2235_v49 = vmul.f32 %v3657_v18, %v3657_v18 }
 0xfc7   : > { %v2236_v19 = vsel %vm456_vm1, %v2235_v49, 0.0 }
 0xfc8   : > { %2237 = vadd.xlane.f32.xlu0 %v2236_v19 }
 0xfc9   : > { %2984 = shalt.err (!%p2981_p1)
}
 0xfca   : > { %s2985_s25 = scalar_lea.hbm %s3668_s20, 512  ;;  %s2989_s14 = scalar_lea.hbm %s3782_s7, 1024 }
 0xfcb   : > { %p2986_p4 = scmp.ne.s32.totalorder %s3668_s20, %s2985_s25  ;;  %p2990_p11 = scmp.lt.s32.totalorder %s3668_s20, %s3782_s7 }
 0xfcc   : > { %p2991_p8 = scmp.lt.s32.totalorder %s2989_s14, %s2985_s25 }
 0xfcd   : > { %p2987_p6 = pnand %p2986_p4, %p3824_p10 }
 0xfce   : > { %p2992_p3 = por %p2991_p8, %p2990_p11 }
 0xfcf   : > { %p2988_p7 = pneg %p2987_p6 }
 0xfd1   : > { %p2993_p12 = pnand %p2992_p3, %p2988_p7 }
 0xfd3   : > { %2996 = shalt.err (!%p2993_p12)
}
 0xfd4   : > { %s3124_s17 = smov 128   ;;  %s3706_s18 = scalar_lea.hbm %s3783_s8, %s2561_s23 }
 0xfd5   : > { %2761 = dma.vmem_to_hbm [thread:$0]  (%p3824_p10), %s3671_s22, 512, %s3668_s20, %s3675_s15, %s3124_s17, %s3124_s17, %s3819_s5  }
 0xfd6   : > { %s2307_s25 = sshll.u32 %s3587_s19, 4  ;;  %s3125_s11 = smov [#allocation11]   ;;  %s2308_s25 = int_to_ptr.vmem [resolvable:$true] %s2307_s25 }
 0xfd7   : > { %s2997_s21 = scalar_lea.vmem %s2308_s25, 512  ;;  %s3001_s14 = sshll.u32 %s3125_s11, 4  ;;  %s3002_s14 = int_to_ptr.vmem [resolvable:$false] %s3001_s14 }
 0xfd8   : > { %p2998_p2 = scmp.ne.s32.totalorder %s2308_s25, %s2997_s21  ;;  %s3003_s24 = scalar_lea.vmem %s3002_s14, 1024 }
 0xfd9   : > { %p3004_p5 = scmp.lt.s32.totalorder %s2308_s25, %s3002_s14  ;;  %p3005_p9 = scmp.lt.s32.totalorder %s3003_s24, %s2997_s21 }
 0xfda   : > { %p2999_p13 = pnand %p2998_p2, %p3824_p10 }
 0xfdb   : > { %p3006_p1 = por %p3005_p9, %p3004_p5 }
 0xfdc   : > { %p3000_p0 = pneg %p2999_p13 }
 0xfde   : > { %p3007_p4 = pnand %p3006_p1, %p3000_p0 }
 0xfe0   : > { %3010 = shalt.err (!%p3007_p4)
}
 0xfe1   : > { %s3011_s19 = scalar_lea.hbm %s3706_s18, 512  ;;  %s3015_s22 = scalar_lea.hbm %s3783_s8, 1024 }
 0xfe2   : > { %p3012_p6 = scmp.ne.s32.totalorder %s3706_s18, %s3011_s19  ;;  %p3016_p8 = scmp.lt.s32.totalorder %s3706_s18, %s3783_s8 }
 0xfe3   : > { %p3017_p3 = scmp.lt.s32.totalorder %s3015_s22, %s3011_s19 }
 0xfe4   : > { %p3013_p7 = pnand %p3012_p6, %p3824_p10 }
 0xfe5   : > { %p3018_p12 = por %p3017_p3, %p3016_p8 }
 0xfe6   : > { %p3014_p11 = pneg %p3013_p7 }
 0xfe8   : > { %p3019_p2 = pnand %p3018_p12, %p3014_p11 }
 0xfea   : > { %3022 = shalt.err (!%p3019_p2)
}
 0xfeb   : > { %2762 = dma.vmem_to_hbm [thread:$0]  (%p3824_p10), %s2308_s25, 512, %s3706_s18, %s3675_s15, %s3124_s17, %s3124_s17, %s3819_s5   ;;  %v2246_v23 = vrot.slane %v3642_v53, %v1249_v50  ;;  %v2251_v25 = vrot.slane %v3642_v53, %v1255_v1 }
 0xfec   : > { %s2554_s16 = sshll.u32 %s3193_s9, 7  ;;  %s401_s21 = scalar_lea.vmem [#allocation8], %s3318_s12 }
 0xfed   : > { %s2278_s5 = sshll.u32 %s401_s21, 4  ;;  %s2276_s18 = scalar_lea.hbm %s3781_s6, %s2554_s16  ;;  %s2279_s5 = int_to_ptr.vmem [resolvable:$true] %s2278_s5 }
 0xfee   : > { %s2255_s25 = scalar_lea.sflag [#allocation4], %s3315_s29  ;;  %s3023_s11 = scalar_lea.vmem %s2279_s5, 128 }
 0xfef   : > { %p3024_p13 = scmp.ne.s32.totalorder %s2279_s5, %s3023_s11  ;;  %s3126_s14 = smov [#allocation8]  }
 0xff0   : > { %s3027_s24 = sshll.u32 %s3126_s14, 4  ;;  %s3028_s24 = int_to_ptr.vmem [resolvable:$false] %s3027_s24 }
 0xff1   : > { %p3025_p0 = pnand %p3024_p13, %p3824_p10  ;;  %s3029_s9 = scalar_lea.vmem %s3028_s24, 256 }
 0xff2   : > { %p3030_p9 = scmp.lt.s32.totalorder %s2279_s5, %s3028_s24  ;;  %p3031_p1 = scmp.lt.s32.totalorder %s3029_s9, %s3023_s11 }
 0xff3   : > { %p3026_p5 = pneg %p3025_p0 }
 0xff4   : > { %p3032_p4 = por %p3031_p1, %p3030_p9 }
 0xff6   : > { %p3033_p6 = pnand %p3032_p4, %p3026_p5 }
0x1051   : > { %v2238_v20 = vpop.xlane.xlu0 %2237 }
0x1052   : > { %v2239_v21 = vmul.f32 0.03125, %v2238_v20 }
0x1054   : > { %v2240_v22 = vadd.f32 1e-05, %v2239_v21 }
0x1056   : > { %2887 = vrsqrt.f32 %v2240_v22 }
0x1063   : > { %v2888_v24 = vpop.eup %2887 }
0x1064   : > { %v2242_v27 = vmul.f32 %v2888_v24, %v3657_v18 }
0x1066   : > { %v2247_v28 = vmul.f32 %v2246_v23, %v2242_v27 }
0x1068   : > { %v2252_v37 = vadd.f32 %v2251_v25, %v2247_v28 }
0x106a   : > { %2253 = vst.msk [vmem:[%s401_s21] sm:$0xff] %vm456_vm1, %v2252_v37 }
0x106b   : > { %3036 = shalt.err (!%p3033_p6)
}
0x106c   : > { %s3037_s12 = scalar_lea.hbm %s2276_s18, 128  ;;  %s3041_s23 = scalar_lea.hbm %s3781_s6, 256 }
0x106d   : > { %p3038_p7 = scmp.ne.s32.totalorder %s2276_s18, %s3037_s12  ;;  %p3042_p3 = scmp.lt.s32.totalorder %s2276_s18, %s3781_s6 }
0x106e   : > { %p3043_p12 = scmp.lt.s32.totalorder %s3041_s23, %s3037_s12 }
0x106f   : > { %p3039_p11 = pnand %p3038_p7, %p3824_p10 }
0x1070   : > { %p3044_p2 = por %p3043_p12, %p3042_p3 }
0x1071   : > { %p3040_p8 = pneg %p3039_p11 }
0x1073   : > { %p3045_p13 = pnand %p3044_p2, %p3040_p8 }
0x1075   : > { %3048 = shalt.err (!%p3045_p13)
}
0x1076   : > { %2760 = dma.vmem_to_hbm [thread:$0]  (%p3824_p10), %s2279_s5, 128, %s2276_s18, %s2255_s25  }
0x1077 PF: > { %s3825_s10 = sld [smem:[#allocation18_spill]]  ;;  %s2322_s13 = sand.u32 1, %s3087_s27  }
0x1078   : > { %p3827_p5 = scmp.ge.s32.totalorder %s3099_s30, 2  ;;  %s2323_s16 = scalar_lea.sflag [#allocation4], %s2322_s13 }
0x107d   : > { %p3826_p0 = scmp.ne.s32.totalorder %s3825_s10, 0 }
0x107f   : > { %p2778_p9 = pnand %p3827_p5, %p3826_p0 }
0x1081   : > { %p2779_p1 = pneg %p2778_p9 }
0x1083   : > { %3078 = dma.done.wait (%p2779_p1), %s2323_s16, 128  }
0x1084   : > { %3080 = vsyncadd (%p2779_p1), %s2323_s16, 4294967168  ;;  %s3828_s21 = sadd.s32 4294967294, %s3099_s30  }
0x1085   : > { %s2331_s15 = sand.u32 1, %s3828_s21  }
0x1086   : > { %s2332_s17 = scalar_lea.sflag [#allocation10], %s2331_s15 }
0x1087   : > { %3082 = dma.done.wait (%p2779_p1), %s2332_s17, 1024  }
0x1088   : > { %3084 = vsyncadd (%p2779_p1), %s2332_s17, 4294966272  ;;  %s3829_s30 = sld [smem:[#allocation19_spill]]  ;;  %s3832_s27 = smov %s3091_s28 }
0x1089   : > { %s3830_s26 = sld [smem:[#allocation17_spill]] }
0x108a   : > { %s3831_s29 = sld [smem:[#allocation20_spill]] }
0x108e   : > { %p28_p10 = scmp.ge.s32.totalorder %s3829_s30, 4  }
0x108f   : > { %s3833_s28 = smov %s3830_s26 }
0x1090   :  { %30 = sbr.rel (!%p28_p10) target bundleno = 11 (0xb), region = 144 }
0x1095   :  { %2346 = vsyncpa [#allocation3], 1 }
0x1096   :  { %2348 = vsyncpa [#allocation3 + $0x1], 1 }
0x1097   :  { %2349 = vsyncpa [#allocation6], 1 }
0x1098   :  { %2351 = vsyncpa [#allocation6 + $0x1], 1 }
0x1099   :  { %2352 = vsyncpa [#allocation4], 1 }
0x109a   :  { %2354 = vsyncpa [#allocation4 + $0x1], 1 }
0x109b   :  { %2355 = vsyncpa [#allocation10], 1 }
0x109c   :  { %2357 = vsyncpa [#allocation10 + $0x1], 1 }

</bundles_post_ra>
